<compile_context>
chip_gen: v6e
topology: v6e:2x2x1
jax: 0.10.0
libtpu: 0.0.40
codegen_flags: <defaults>
</compile_context>

<pallas_src>
import functools
import numpy as np

import jax
import jax.numpy as jnp
from jax.experimental import pallas as pl
from jax.experimental.pallas import tpu as pltpu

EPS = 1e-5
ACT_DTYPE = jnp.bfloat16   # activation / weight storage dtype (MXU-native)


# ----------------------------------------------------------------------------
# Pallas kernel 1: fused (x @ w) + bias [+ residual] [-> relu]
#   x: (M, K) bf16, w: (K, N) bf16, bias: (1, N) f32, out: (M, N) bf16
#   Used for 1x1 convolutions and (rare) strided 3x3 convs via im2col.
# ----------------------------------------------------------------------------
_MM_CACHE = {}


def _get_mm_fn(M, K, N, TM, relu, has_res):
    key = (M, K, N, TM, relu, has_res)
    fn = _MM_CACHE.get(key)
    if fn is not None:
        return fn

    def kernel(*refs):
        if has_res:
            x_ref, w_ref, b_ref, r_ref, o_ref = refs
        else:
            x_ref, w_ref, b_ref, o_ref = refs
            r_ref = None
        y = jnp.dot(x_ref[...], w_ref[...], preferred_element_type=jnp.float32)
        y = y + b_ref[...]
        if r_ref is not None:
            y = y + r_ref[...].astype(jnp.float32)
        if relu:
            y = jnp.maximum(y, 0.0)
        o_ref[...] = y.astype(o_ref.dtype)

    in_specs = [
        pl.BlockSpec((TM, K), lambda i: (i, 0)),   # activations / patches
        pl.BlockSpec((K, N), lambda i: (0, 0)),    # folded weight (resident)
        pl.BlockSpec((1, N), lambda i: (0, 0)),    # folded bias (f32, resident)
    ]
    if has_res:
        in_specs.append(pl.BlockSpec((TM, N), lambda i: (i, 0)))

    fn = pl.pallas_call(
        kernel,
        out_shape=jax.ShapeDtypeStruct((M, N), ACT_DTYPE),
        grid_spec=pltpu.PrefetchScalarGridSpec(
            num_scalar_prefetch=0,
            grid=(M // TM,),
            in_specs=in_specs,
            out_specs=pl.BlockSpec((TM, N), lambda i: (i, 0)),
        ),
        compiler_params=pltpu.CompilerParams(
            dimension_semantics=("parallel",)),
    )
    _MM_CACHE[key] = fn
    return fn


def matmul_bias_act(x, w, b, relu, residual=None):
    """x:(M,K)bf16 @ w:(K,N)bf16 + b:(1,N)f32 [+ residual] [relu] -> (M,N)bf16."""
    M, K = x.shape
    N = w.shape[1]
    if M <= 1024:
        TM = M                      # single full-M block, no padding
    else:
        TM = 256
        for t in (512, 256, 128, 64, 32, 16, 8):
            if M % t == 0:
                TM = t
                break
    Mp = ((M + TM - 1) // TM) * TM
    if Mp != M:                     # rare fallback (M has no small divisor)
        x = jnp.pad(x, ((0, Mp - M), (0, 0)))
        if residual is not None:
            residual = jnp.pad(residual, ((0, Mp - M), (0, 0)))
    args = [x, w, b]
    if residual is not None:
        args.append(residual)
    out = _get_mm_fn(Mp, K, N, TM, bool(relu), residual is not None)(*args)
    return out[:M] if Mp != M else out


# ----------------------------------------------------------------------------
# Pallas kernel 2: direct 3x3 stride-1 convolution (no im2col materialization).
#   Grid = (B, Hout).  Three dy-shifted single-row blocks of the padded input are
#   fetched via BlockSpec index_maps; the 3 dx taps are in-VMEM slices.  The 9
#   tap matmuls accumulate in f32; bias/residual/ReLU fused in the epilogue.
# ----------------------------------------------------------------------------
_DC_CACHE = {}


def _get_direct_fn(B, Hp, Wp, Cin, Hout, Wout, Cout, relu, has_res):
    key = (B, Hp, Wp, Cin, Hout, Wout, Cout, relu, has_res)
    fn = _DC_CACHE.get(key)
    if fn is not None:
        return fn

    def kernel(*refs):
        if has_res:
            x0, x1, x2, w_ref, b_ref, r_ref, o_ref = refs
        else:
            x0, x1, x2, w_ref, b_ref, o_ref = refs
            r_ref = None
        xrows = (x0, x1, x2)
        acc = jnp.zeros((Wout, Cout), jnp.float32)
        for dy in range(3):
            row = xrows[dy][0, 0]                      # (Wp, Cin) bf16
            for dx in range(3):
                acc = acc + jnp.dot(row[dx:dx + Wout], w_ref[dy * 3 + dx],
                                    preferred_element_type=jnp.float32)
        y = acc + b_ref[...]
        if r_ref is not None:
            y = y + r_ref[0, 0].astype(jnp.float32)
        if relu:
            y = jnp.maximum(y, 0.0)
        o_ref[0, 0] = y.astype(o_ref.dtype)

    # The same padded input array is passed three times; each spec picks the
    # padded row (h + dy) for its tap.
    x_specs = [pl.BlockSpec((1, 1, Wp, Cin),
                            (lambda b, h, dy=dy: (b, h + dy, 0, 0)))
               for dy in range(3)]
    in_specs = x_specs + [
        pl.BlockSpec((9, Cin, Cout), lambda b, h: (0, 0, 0)),   # folded weight
        pl.BlockSpec((1, Cout), lambda b, h: (0, 0)),           # folded bias
    ]
    if has_res:
        in_specs.append(pl.BlockSpec((1, 1, Wout, Cout), lambda b, h: (b, h, 0, 0)))

    fn = pl.pallas_call(
        kernel,
        out_shape=jax.ShapeDtypeStruct((B, Hout, Wout, Cout), ACT_DTYPE),
        grid_spec=pltpu.PrefetchScalarGridSpec(
            num_scalar_prefetch=0,
            grid=(B, Hout),
            in_specs=in_specs,
            out_specs=pl.BlockSpec((1, 1, Wout, Cout), lambda b, h: (b, h, 0, 0)),
        ),
        compiler_params=pltpu.CompilerParams(
            dimension_semantics=("parallel", "parallel")),
    )
    _DC_CACHE[key] = fn
    return fn


# ----------------------------------------------------------------------------
# Convolution dispatcher (folded conv+bn, fused bias/residual/relu)
# ----------------------------------------------------------------------------
def conv(x, f, stride=1, relu=True, residual=None):
    """x: (B,H,W,Cin) bf16 NHWC; f = {'w': (kh,kw,Cin,Cout) bf16, 'b': (1,Cout) f32}."""
    w, b = f['w'], f['b']
    kh, kw, cin, cout = w.shape
    B, H, W, _ = x.shape

    if kh == 1:                                        # 1x1 convolution
        if stride != 1:
            x = x[:, ::stride, ::stride, :]
            B, H, W, _ = x.shape
        x2 = x.reshape(B * H * W, cin)
        r2 = residual.reshape(B * H * W, cout) if residual is not None else None
        y = matmul_bias_act(x2, w.reshape(cin, cout), b, relu, r2)
        return y.reshape(B, H, W, cout)

    pad = kh // 2
    Hout = (H + 2 * pad - kh) // stride + 1
    Wout = (W + 2 * pad - kw) // stride + 1
    xp = jnp.pad(x, ((0, 0), (pad, pad), (pad, pad), (0, 0)))

    if stride == 1:                                    # direct 3x3 Pallas conv
        fn = _get_direct_fn(B, xp.shape[1], xp.shape[2], cin, Hout, Wout, cout,
                            bool(relu), residual is not None)
        args = [xp, xp, xp, w.reshape(kh * kw, cin, cout), b]
        if residual is not None:
            args.append(residual)
        return fn(*args)

    # Strided 3x3 convs (few, small outputs): im2col + fused matmul kernel.
    # TODO(synk): strided 3x3 convs still materialize im2col patches in HBM.
    cols = []
    for dy in range(kh):
        for dx in range(kw):
            cols.append(xp[:, dy:dy + (Hout - 1) * stride + 1:stride,
                           dx:dx + (Wout - 1) * stride + 1:stride, :])
    patches = jnp.concatenate(cols, axis=-1).reshape(B * Hout * Wout, kh * kw * cin)
    r2 = residual.reshape(B * Hout * Wout, cout) if residual is not None else None
    y = matmul_bias_act(patches, w.reshape(kh * kw * cin, cout), b, relu, r2)
    return y.reshape(B, Hout, Wout, cout)


# ----------------------------------------------------------------------------
# Bilinear resize with align_corners=True (plain JAX glue, fused under jit)
# ----------------------------------------------------------------------------
def bilinear_ac(x, out_h, out_w):
    B, H, W, C = x.shape
    if (H, W) == (out_h, out_w):
        return x.astype(jnp.float32)

    def coords(n_in, n_out):
        if n_out == 1 or n_in == 1:
            z = jnp.zeros((n_out,), jnp.int32)
            return z, z, jnp.zeros((n_out,), jnp.float32)
        s = jnp.arange(n_out, dtype=jnp.float32) * ((n_in - 1) / (n_out - 1))
        i0 = jnp.clip(jnp.floor(s).astype(jnp.int32), 0, n_in - 1)
        i1 = jnp.clip(i0 + 1, 0, n_in - 1)
        return i0, i1, s - i0.astype(jnp.float32)

    y0, y1, fy = coords(H, out_h)
    x0, x1, fx = coords(W, out_w)
    xf = x.astype(jnp.float32)
    top, bot = xf[:, y0], xf[:, y1]
    rows = top * (1.0 - fy)[None, :, None, None] + bot * fy[None, :, None, None]
    left, right = rows[:, :, x0], rows[:, :, x1]
    return left * (1.0 - fx)[None, None, :, None] + right * fx[None, None, :, None]


# ----------------------------------------------------------------------------
# Deterministic parameter construction (mirrors HRNet-w18 __init__ shapes)
# ----------------------------------------------------------------------------
_rng = np.random.RandomState(0)


def conv_p(cin, cout, k, bias=False):
    fan_in = cin * k * k
    w = (_rng.randn(k, k, cin, cout) * np.sqrt(2.0 / fan_in)).astype(np.float32)
    p = {'w': jnp.asarray(w)}
    if bias:
        p['b'] = jnp.asarray((_rng.randn(cout) * 0.01).astype(np.float32))
    return p


def bn_p(c):
    return {
        'gamma': jnp.asarray((1.0 + 0.1 * _rng.randn(c)).astype(np.float32)),
        'beta': jnp.asarray((0.1 * _rng.randn(c)).astype(np.float32)),
        'mean': jnp.zeros((c,), jnp.float32),
        'var': jnp.ones((c,), jnp.float32),
    }


def make_bottleneck(cin, planes, downsample=False):
    exp = 4
    p = dict(conv1=conv_p(cin, planes, 1), bn1=bn_p(planes),
             conv2=conv_p(planes, planes, 3), bn2=bn_p(planes),
             conv3=conv_p(planes, planes * exp, 1), bn3=bn_p(planes * exp))
    if downsample:
        p['ds_conv'] = conv_p(cin, planes * exp, 1)
        p['ds_bn'] = bn_p(planes * exp)
    return p


def make_basic(c):
    return dict(conv1=conv_p(c, c, 3), bn1=bn_p(c),
                conv2=conv_p(c, c, 3), bn2=bn_p(c))


def make_hr_module(channels, num_blocks=4):
    nb = len(channels)
    branches = [[make_basic(c) for _ in range(num_blocks)] for c in channels]
    fuse = []
    for i in range(nb):
        row = []
        for j in range(nb):
            if j == i:
                row.append(None)
            elif j > i:
                row.append({'conv': conv_p(channels[j], channels[i], 1),
                            'bn': bn_p(channels[i])})
            else:
                chain = []
                for k in range(i - j):
                    if k == i - j - 1:
                        chain.append({'conv': conv_p(channels[j], channels[i], 3),
                                      'bn': bn_p(channels[i])})
                    else:
                        chain.append({'conv': conv_p(channels[j], channels[j], 3),
                                      'bn': bn_p(channels[j])})
                row.append({'chain': chain})
        fuse.append(row)
    return {'branches': branches, 'fuse': fuse}


def build_params(backbone='hrnetv2_w18'):
    nf = {'hrnetv2_w18': [18, 36, 72, 144],
          'hrnetv2_w32': [32, 64, 128, 256],
          'hrnetv2_w48': [48, 96, 192, 384]}[backbone]
    P = {}
    P['conv1'], P['bn1'] = conv_p(3, 64, 3), bn_p(64)
    P['conv2'], P['bn2'] = conv_p(64, 64, 3), bn_p(64)
    layer1 = [make_bottleneck(64, 64, downsample=True)]
    layer1 += [make_bottleneck(256, 64, downsample=False) for _ in range(3)]
    P['layer1'] = layer1
    P['transition1'] = [
        {'conv': conv_p(256, nf[0], 3), 'bn': bn_p(nf[0])},
        {'conv': conv_p(256, nf[1], 3), 'bn': bn_p(nf[1])},
    ]
    P['stage2'] = [make_hr_module([nf[0], nf[1]])]
    P['transition2'] = [None, None,
                        {'conv': conv_p(nf[1], nf[2], 3), 'bn': bn_p(nf[2])}]
    P['stage3'] = [make_hr_module([nf[0], nf[1], nf[2]]) for _ in range(4)]
    P['transition3'] = [None, None, None,
                        {'conv': conv_p(nf[2], nf[3], 3), 'bn': bn_p(nf[3])}]
    P['stage4'] = [make_hr_module(nf) for _ in range(3)]
    c = int(np.sum(nf))  # 270 for w18
    P['last'] = [
        {'conv': conv_p(c, c, 1, bias=True), 'bn': bn_p(c)},
        {'conv': conv_p(c, c, 3, bias=True), 'bn': bn_p(c)},
    ]
    return P


# ----------------------------------------------------------------------------
# One-time parameter folding: BN (+ conv bias) -> per-channel weight scale & bias.
# Weights cast to bf16 once; bias kept f32 for the in-kernel f32 epilogue.
# ----------------------------------------------------------------------------
def fold(conv_par, bn_par):
    scale = bn_par['gamma'] / jnp.sqrt(bn_par['var'] + EPS)
    w = (conv_par['w'] * scale).astype(ACT_DTYPE)
    b = bn_par['beta'] - bn_par['mean'] * scale
    if 'b' in conv_par:
        b = b + conv_par['b'] * scale
    return {'w': w, 'b': b.reshape(1, -1).astype(jnp.float32)}


def fold_module(m):
    branches = [[{'conv1': fold(blk['conv1'], blk['bn1']),
                  'conv2': fold(blk['conv2'], blk['bn2'])} for blk in br]
                for br in m['branches']]
    fuse = []
    for row in m['fuse']:
        frow = []
        for e in row:
            if e is None:
                frow.append(None)
            elif 'chain' in e:
                frow.append({'chain': [fold(c['conv'], c['bn']) for c in e['chain']]})
            else:
                frow.append(fold(e['conv'], e['bn']))
        fuse.append(frow)
    return {'branches': branches, 'fuse': fuse}


def fold_params(P):
    F = {}
    F['stem'] = [fold(P['conv1'], P['bn1']), fold(P['conv2'], P['bn2'])]
    layer1 = []
    for blk in P['layer1']:
        fb = {'conv1': fold(blk['conv1'], blk['bn1']),
              'conv2': fold(blk['conv2'], blk['bn2']),
              'conv3': fold(blk['conv3'], blk['bn3'])}
        if 'ds_conv' in blk:
            fb['ds'] = fold(blk['ds_conv'], blk['ds_bn'])
        layer1.append(fb)
    F['layer1'] = layer1
    F['transition1'] = [fold(t['conv'], t['bn']) for t in P['transition1']]
    F['stage2'] = [fold_module(m) for m in P['stage2']]
    F['transition2'] = [None if t is None else fold(t['conv'], t['bn'])
                        for t in P['transition2']]
    F['stage3'] = [fold_module(m) for m in P['stage3']]
    F['transition3'] = [None if t is None else fold(t['conv'], t['bn'])
                        for t in P['transition3']]
    F['stage4'] = [fold_module(m) for m in P['stage4']]
    F['last'] = [fold(l['conv'], l['bn']) for l in P['last']]
    return F


# ----------------------------------------------------------------------------
# Forward passes (mirror PyTorch control flow exactly); jitted per module so
# identical HR modules reuse one executable and all glue is fused by XLA.
# ----------------------------------------------------------------------------
def bottleneck_fwd(x, p):
    out = conv(x, p['conv1'], stride=1, relu=True)
    out = conv(out, p['conv2'], stride=1, relu=True)
    residual = conv(x, p['ds'], stride=1, relu=False) if 'ds' in p else x
    # fused: bn3(conv3(out)) + residual, then relu
    return conv(out, p['conv3'], stride=1, relu=True, residual=residual)


def basic_fwd(x, p):
    out = conv(x, p['conv1'], stride=1, relu=True)
    return conv(out, p['conv2'], stride=1, relu=True, residual=x)


@jax.jit
def stem_fwd(p, x):
    x = x.astype(ACT_DTYPE)
    x = conv(x, p[0], stride=2, relu=True)
    x = conv(x, p[1], stride=2, relu=True)
    return x


@jax.jit
def layer1_fwd(p, x):
    for blk in p:
        x = bottleneck_fwd(x, blk)
    return x


@functools.partial(jax.jit, static_argnames=('stride',))
def transition_fwd(p, x, *, stride):
    return conv(x, p, stride=stride, relu=True)


@jax.jit
def hr_module_fwd(p, xs):
    nb = len(xs)
    xs = list(xs)
    for i in range(nb):
        for blk in p['branches'][i]:
            xs[i] = basic_fwd(xs[i], blk)
    outs = []
    for i in range(nb):
        y = None
        for j in range(nb):
            if j == i:
                t = xs[j].astype(jnp.float32)
            elif j > i:
                t = conv(xs[j], p['fuse'][i][j], stride=1, relu=False)
                t = bilinear_ac(t, xs[i].shape[1], xs[i].shape[2])
            else:
                t = xs[j]
                chain = p['fuse'][i][j]['chain']
                for idx, c in enumerate(chain):
                    t = conv(t, c, stride=2, relu=(idx != len(chain) - 1))
                t = t.astype(jnp.float32)
            y = t if y is None else y + t
        outs.append(jnp.maximum(y, 0.0).astype(ACT_DTYPE))
    return tuple(outs)


@jax.jit
def head_fwd(p, ys):
    # TODO(synk): the fuse/head upsample+concat is plain-JAX glue, not fused into
    #             the conv kernels.
    h0, w0 = ys[0].shape[1], ys[0].shape[2]
    parts = [ys[0]] + [bilinear_ac(y, h0, w0).astype(ACT_DTYPE) for y in ys[1:]]
    x = jnp.concatenate(parts, axis=-1)
    x = conv(x, p[0], stride=1, relu=True)
    x = conv(x, p[1], stride=1, relu=True)
    return x.astype(jnp.float32)


def hrnet_backbone_full(F, inputs):
    """HRNet_Backbone.forward -> (low_level_features, x), both NHWC float32."""
    x = stem_fwd(F['stem'], inputs)
    low = layer1_fwd(F['layer1'], x)

    y_list = [transition_fwd(F['transition1'][0], low, stride=1),
              transition_fwd(F['transition1'][1], low, stride=2)]
    for m in F['stage2']:
        y_list = list(hr_module_fwd(m, tuple(y_list)))

    xl = []
    for i in range(3):
        t = F['transition2'][i]
        if t is None:
            xl.append(y_list[i])
        else:
            src = y_list[i] if i < 2 else y_list[-1]
            xl.append(transition_fwd(t, src, stride=2))
    y_list = xl
    for m in F['stage3']:
        y_list = list(hr_module_fwd(m, tuple(y_list)))

    xl = []
    for i in range(4):
        t = F['transition3'][i]
        if t is None:
            xl.append(y_list[i])
        else:
            src = y_list[i] if i < 3 else y_list[-1]
            xl.append(transition_fwd(t, src, stride=2))
    y_list = xl
    for m in F['stage4']:
        y_list = list(hr_module_fwd(m, tuple(y_list)))

    out = head_fwd(F['last'], tuple(y_list))
    return low.astype(jnp.float32), out


# ----------------------------------------------------------------------------
if __name__ == "__main__":
    B, H, W = 2, 32, 32  # small synthetic shapes (input is NHWC: (B, H, W, 3))
    key = jax.random.PRNGKey(0)
    inputs = jax.random.normal(key, (B, H, W, 3), dtype=jnp.float32)

    params = fold_params(build_params('hrnetv2_w18'))
    low, out = hrnet_backbone_full(params, inputs)
    low = jax.block_until_ready(low)
    out = jax.block_until_ready(out)

    assert low.shape == (B, H // 4, W // 4, 256), low.shape
    assert out.shape == (B, H // 4, W // 4, 270), out.shape
    assert bool(jnp.all(jnp.isfinite(low))) and bool(jnp.all(jnp.isfinite(out)))
    print("KERNEL_OK")
</pallas_src>

<mosaic_0001>
module attributes {stable_mosaic.version = 11 : i64} {
  func.func @kernel(%arg0: i32, %arg1: memref<512x27xbf16, #tpu.memory_space<vmem>>, %arg2: memref<27x64xbf16, #tpu.memory_space<vmem>>, %arg3: memref<1x64xf32, #tpu.memory_space<vmem>>, %arg4: memref<512x64xbf16, #tpu.memory_space<vmem>>) attributes {dimension_semantics = [#tpu.dimension_semantics<parallel>], iteration_bounds = array<i64: 1>, scalar_prefetch = 0 : i64, scratch_operands = 0 : i64, tpu.core_type = #tpu.core_type<tc>, window_params = [{transform_indices = @transform_0, window_bounds = array<i64: 512, 27>}, {pipeline_mode = #tpu.pipeline_mode<synchronous>, transform_indices = @transform_1, window_bounds = array<i64: 27, 64>}, {pipeline_mode = #tpu.pipeline_mode<synchronous>, transform_indices = @transform_2, window_bounds = array<i64: 1, 64>}, {transform_indices = @transform_3, window_bounds = array<i64: 512, 64>}]} {
    %c0 = arith.constant 0 : index
    %c0_0 = arith.constant 0 : index
    %0 = vector.load %arg1[%c0, %c0_0] : memref<512x27xbf16, #tpu.memory_space<vmem>>, vector<512x27xbf16>
    %c0_1 = arith.constant 0 : index
    %c0_2 = arith.constant 0 : index
    %1 = vector.load %arg2[%c0_1, %c0_2] : memref<27x64xbf16, #tpu.memory_space<vmem>>, vector<27x64xbf16>
    %cst = arith.constant dense<0.000000e+00> : vector<512x64xf32>
    %2 = tpu.matmul %0, %1, %cst {dimension_numbers = #tpu.dot_dimension_numbers<[1], [0], [0], [1], [0, 0, 1, 1], [], []>} : vector<512x27xbf16>, vector<27x64xbf16>, vector<512x64xf32> -> vector<512x64xf32>
    %c0_3 = arith.constant 0 : index
    %c0_4 = arith.constant 0 : index
    %3 = vector.load %arg3[%c0_3, %c0_4] : memref<1x64xf32, #tpu.memory_space<vmem>>, vector<1x64xf32>
    %4 = vector.broadcast %3 : vector<1x64xf32> to vector<512x64xf32>
    %5 = arith.addf %2, %4 : vector<512x64xf32>
    %cst_5 = arith.constant 0.000000e+00 : f32
    %6 = vector.broadcast %cst_5 : f32 to vector<512x64xf32>
    %7 = arith.maximumf %5, %6 : vector<512x64xf32>
    %8 = arith.truncf %7 : vector<512x64xf32> to vector<512x64xbf16>
    %c0_6 = arith.constant 0 : index
    %c0_7 = arith.constant 0 : index
    %9 = vector.load %arg4[%c0_6, %c0_7] : memref<512x64xbf16, #tpu.memory_space<vmem>>, vector<512x64xbf16>
    tpu.vector_store %arg4[%c0_6, %c0_7], %8 {strides = array<i32>} : memref<512x64xbf16, #tpu.memory_space<vmem>>, vector<512x64xbf16>,
    return
  }
  func.func @transform_0(%arg0: i32) -> (i32, i32) {
    %c0_i32 = arith.constant 0 : i32
    %c0_i32_0 = arith.constant 0 : i32
    return %arg0, %c0_i32 : i32, i32
  }
  func.func @transform_1(%arg0: i32) -> (i32, i32) {
    %c0_i32 = arith.constant 0 : i32
    %c0_i32_0 = arith.constant 0 : i32
    %c0_i32_1 = arith.constant 0 : i32
    return %c0_i32, %c0_i32_0 : i32, i32
  }
  func.func @transform_2(%arg0: i32) -> (i32, i32) {
    %c0_i32 = arith.constant 0 : i32
    %c0_i32_0 = arith.constant 0 : i32
    %c0_i32_1 = arith.constant 0 : i32
    return %c0_i32, %c0_i32_0 : i32, i32
  }
  func.func @transform_3(%arg0: i32) -> (i32, i32) {
    %c0_i32 = arith.constant 0 : i32
    %c0_i32_0 = arith.constant 0 : i32
    return %arg0, %c0_i32 : i32, i32
  }
}

module attributes {stable_mosaic.version = 11 : i64} {
  func.func @kernel(%arg0: i32, %arg1: memref<128x576xbf16, #tpu.memory_space<vmem>>, %arg2: memref<576x64xbf16, #tpu.memory_space<vmem>>, %arg3: memref<1x64xf32, #tpu.memory_space<vmem>>, %arg4: memref<128x64xbf16, #tpu.memory_space<vmem>>) attributes {dimension_semantics = [#tpu.dimension_semantics<parallel>], iteration_bounds = array<i64: 1>, scalar_prefetch = 0 : i64, scratch_operands = 0 : i64, tpu.core_type = #tpu.core_type<tc>, window_params = [{transform_indices = @transform_0, window_bounds = array<i64: 128, 576>}, {pipeline_mode = #tpu.pipeline_mode<synchronous>, transform_indices = @transform_1, window_bounds = array<i64: 576, 64>}, {pipeline_mode = #tpu.pipeline_mode<synchronous>, transform_indices = @transform_2, window_bounds = array<i64: 1, 64>}, {transform_indices = @transform_3, window_bounds = array<i64: 128, 64>}]} {
    %c0 = arith.constant 0 : index
    %c0_0 = arith.constant 0 : index
    %0 = vector.load %arg1[%c0, %c0_0] : memref<128x576xbf16, #tpu.memory_space<vmem>>, vector<128x576xbf16>
    %c0_1 = arith.constant 0 : index
    %c0_2 = arith.constant 0 : index
    %1 = vector.load %arg2[%c0_1, %c0_2] : memref<576x64xbf16, #tpu.memory_space<vmem>>, vector<576x64xbf16>
    %cst = arith.constant dense<0.000000e+00> : vector<128x64xf32>
    %2 = tpu.matmul %0, %1, %cst {dimension_numbers = #tpu.dot_dimension_numbers<[1], [0], [0], [1], [0, 0, 1, 1], [], []>} : vector<128x576xbf16>, vector<576x64xbf16>, vector<128x64xf32> -> vector<128x64xf32>
    %c0_3 = arith.constant 0 : index
    %c0_4 = arith.constant 0 : index
    %3 = vector.load %arg3[%c0_3, %c0_4] : memref<1x64xf32, #tpu.memory_space<vmem>>, vector<1x64xf32>
    %4 = vector.broadcast %3 : vector<1x64xf32> to vector<128x64xf32>
    %5 = arith.addf %2, %4 : vector<128x64xf32>
    %cst_5 = arith.constant 0.000000e+00 : f32
    %6 = vector.broadcast %cst_5 : f32 to vector<128x64xf32>
    %7 = arith.maximumf %5, %6 : vector<128x64xf32>
    %8 = arith.truncf %7 : vector<128x64xf32> to vector<128x64xbf16>
    %c0_6 = arith.constant 0 : index
    %c0_7 = arith.constant 0 : index
    %9 = vector.load %arg4[%c0_6, %c0_7] : memref<128x64xbf16, #tpu.memory_space<vmem>>, vector<128x64xbf16>
    tpu.vector_store %arg4[%c0_6, %c0_7], %8 {strides = array<i32>} : memref<128x64xbf16, #tpu.memory_space<vmem>>, vector<128x64xbf16>,
    return
  }
  func.func @transform_0(%arg0: i32) -> (i32, i32) {
    %c0_i32 = arith.constant 0 : i32
    %c0_i32_0 = arith.constant 0 : i32
    return %arg0, %c0_i32 : i32, i32
  }
  func.func @transform_1(%arg0: i32) -> (i32, i32) {
    %c0_i32 = arith.constant 0 : i32
    %c0_i32_0 = arith.constant 0 : i32
    %c0_i32_1 = arith.constant 0 : i32
    return %c0_i32, %c0_i32_0 : i32, i32
  }
  func.func @transform_2(%arg0: i32) -> (i32, i32) {
    %c0_i32 = arith.constant 0 : i32
    %c0_i32_0 = arith.constant 0 : i32
    %c0_i32_1 = arith.constant 0 : i32
    return %c0_i32, %c0_i32_0 : i32, i32
  }
  func.func @transform_3(%arg0: i32) -> (i32, i32) {
    %c0_i32 = arith.constant 0 : i32
    %c0_i32_0 = arith.constant 0 : i32
    return %arg0, %c0_i32 : i32, i32
  }
}

</mosaic_0001>

<bundles_post_ra>
// kernel: stem_fwd.2
= control target key start
LH: loop header
LB: loop body
LE: loop exit
PB: predicated region body
PF: predicated region fallthrough
CT: control target
= control target key end

     0   :  { %vm358_vm0 = vcmask 1044480   ;;  %vm359_vm1 = vcmask 1045504   ;;  %v1379_v1 = vmov 65535   ;;  %vm261_vm2 = vcmask 220160   ;;  %s1859_s1 = inlined_call_operand.vmem [shape: bf16[27,64], index: 1, kind: input, shape index: {}]   ;;  %s1860_s0 = inlined_call_operand.vmem [shape: bf16[512,27], index: 0, kind: input, shape index: {}]   ;;  %s1861_s2 = inlined_call_operand.vmem [shape: f32[1,64], index: 2, kind: input, shape index: {}]   ;;  %s1862_s3 = inlined_call_operand.vmem [shape: bf16[512,64], index: 3, kind: output, shape index: {}]  }
   0x1   :  { %v1345_v0 = vld [vmem:[%s1859_s1 + $0x8] sm:$0x3f]   ;;  %v360_v2 = vsel %vm358_vm0, 4294967295, %v1379_v1  ;;  %v1347_v4 = vld [vmem:[%s1860_s0] sm:$0xff]   ;;  %v1351_v10 = vld [vmem:[%s1860_s0 + $0x10] sm:$0xff]   ;;  %vm974_vm3 = vcmask 519168  }
   0x2   :  { %v361_v3 = vsel %vm359_vm1, %v360_v2, 0  ;;  %v1346_v6 = vld [vmem:[%s1859_s1] sm:$0xff]   ;;  %1276 = vmatprep.mubr.msk.bf16.mxu0 %vm261_vm2, %v1347_v4  ;;  %v1349_v8 = vld [vmem:[%s1860_s0 + $0x8] sm:$0xff]   ;;  %v1352_v11 = vld [vmem:[%s1860_s0 + $0x90] sm:$0xff]  }
   0x3   :  { %v363_v5 = vand.u32 %v1345_v0, %v361_v3  ;;  %v1348_v7 = vld [vmem:[%s1860_s0 + $0x80] sm:$0xff]   ;;  %v1350_v9 = vld [vmem:[%s1860_s0 + $0x88] sm:$0xff]   ;;  %v1353_v12 = vld [vmem:[%s1860_s0 + $0x18] sm:$0xff]  }
   0x4   :  { %1308 = vmatprep.mubr.msk.bf16.mxu1 %vm261_vm2, %v1348_v7  ;;  %v1354_v13 = vld [vmem:[%s1860_s0 + $0x98] sm:$0xff]   ;;  %v1355_v14 = vld [vmem:[%s1860_s0 + $0x20] sm:$0xff]   ;;  %v1357_v16 = vld [vmem:[%s1860_s0 + $0x28] sm:$0xff]  }
   0x5   :  { %1272 = vmatprep.subr.bf16.mxu0 %v363_v5  ;;  %1340 = vmatprep.subr.bf16.mxu1 %v363_v5  ;;  %v1356_v15 = vld [vmem:[%s1860_s0 + $0xa0] sm:$0xff]   ;;  %v1358_v17 = vld [vmem:[%s1860_s0 + $0xa8] sm:$0xff]   ;;  %v1359_v18 = vld [vmem:[%s1860_s0 + $0x30] sm:$0xff]  }
   0x6   :  { %1273 = vmatpush3.bf16.msra.mxu0 %v363_v5  ;;  %1342 = vmatpush3.bf16.msra.mxu1 %v363_v5  ;;  %v1360_v19 = vld [vmem:[%s1860_s0 + $0xb0] sm:$0xff]   ;;  %v1361_v20 = vld [vmem:[%s1860_s0 + $0x38] sm:$0xff]   ;;  %v1363_v22 = vld [vmem:[%s1860_s0 + $0x40] sm:$0xff]  }
   0x7   :  { %1274 = vmatprep.subr.bf16.mxu0 %v1346_v6  ;;  %1341 = vmatprep.subr.bf16.mxu1 %v1346_v6  ;;  %v1362_v21 = vld [vmem:[%s1860_s0 + $0xb8] sm:$0xff]   ;;  %v1364_v23 = vld [vmem:[%s1860_s0 + $0xc0] sm:$0xff]   ;;  %v1365_v24 = vld [vmem:[%s1860_s0 + $0x48] sm:$0xff]  }
   0x8   :  { %v1366_v25 = vld [vmem:[%s1860_s0 + $0xc8] sm:$0xff]   ;;  %v1367_v26 = vld [vmem:[%s1860_s0 + $0x50] sm:$0xff]   ;;  %v1369_v28 = vld [vmem:[%s1860_s0 + $0x58] sm:$0xff]  }
   0x9   :  { %v1368_v27 = vld [vmem:[%s1860_s0 + $0xd0] sm:$0xff]   ;;  %v1370_v29 = vld [vmem:[%s1860_s0 + $0xd8] sm:$0xff]   ;;  %v1371_v30 = vld [vmem:[%s1860_s0 + $0x60] sm:$0xff]  }
   0xa   :  { %1275 = vmatpush3.bf16.msra.mxu0 %v1346_v6  ;;  %1343 = vmatpush3.bf16.msra.mxu1 %v1346_v6  ;;  %v1372_v31 = vld [vmem:[%s1860_s0 + $0xe0] sm:$0xff]   ;;  %v1373_v32 = vld [vmem:[%s1860_s0 + $0x68] sm:$0xff]   ;;  %v1375_v34 = vld [vmem:[%s1860_s0 + $0x70] sm:$0xff]  }
   0xb   :  { %v1374_v33 = vld [vmem:[%s1860_s0 + $0xe8] sm:$0xff]   ;;  %v1376_v35 = vld [vmem:[%s1860_s0 + $0xf0] sm:$0xff]   ;;  %v1377_v36 = vld [vmem:[%s1860_s0 + $0x78] sm:$0xff]  }
   0xc   :  { %v1378_v37 = vld [vmem:[%s1860_s0 + $0xf8] sm:$0xff]   ;;  %v1537_v38 = vld [vmem:[%s1861_s2] ss:$0 sm:$0xff] }
   0xd   :  { %1277 = vmatmul.mubr.msk.bf16.vlgmr.msra.gmra.mxu0 %vm261_vm2, %v1349_v8  ;;  %1309 = vmatmul.mubr.msk.bf16.vlgmr.msra.gmra.mxu1 %vm261_vm2, %v1350_v9 }
   0xe   :  { %1280 = vmatprep.mubr.msk.bf16.mxu0 %vm261_vm2, %v1351_v10  ;;  %1312 = vmatprep.mubr.msk.bf16.mxu1 %vm261_vm2, %v1352_v11 }
  0x15   :  { %1281 = vmatmul.mubr.msk.bf16.gmra.mxu0 %vm261_vm2, %v1353_v12  ;;  %1313 = vmatmul.mubr.msk.bf16.gmra.mxu1 %vm261_vm2, %v1354_v13 }
  0x16   :  { %1284 = vmatprep.mubr.msk.bf16.mxu0 %vm261_vm2, %v1355_v14  ;;  %1316 = vmatprep.mubr.msk.bf16.mxu1 %vm261_vm2, %v1356_v15 }
  0x1d   :  { %1285 = vmatmul.mubr.msk.bf16.gmra.mxu0 %vm261_vm2, %v1357_v16  ;;  %1317 = vmatmul.mubr.msk.bf16.gmra.mxu1 %vm261_vm2, %v1358_v17 }
  0x1e   :  { %1288 = vmatprep.mubr.msk.bf16.mxu0 %vm261_vm2, %v1359_v18  ;;  %1320 = vmatprep.mubr.msk.bf16.mxu1 %vm261_vm2, %v1360_v19 }
  0x25   :  { %1289 = vmatmul.mubr.msk.bf16.gmra.mxu0 %vm261_vm2, %v1361_v20  ;;  %1321 = vmatmul.mubr.msk.bf16.gmra.mxu1 %vm261_vm2, %v1362_v21 }
  0x26   :  { %1292 = vmatprep.mubr.msk.bf16.mxu0 %vm261_vm2, %v1363_v22  ;;  %1324 = vmatprep.mubr.msk.bf16.mxu1 %vm261_vm2, %v1364_v23 }
  0x2d   :  { %1293 = vmatmul.mubr.msk.bf16.gmra.mxu0 %vm261_vm2, %v1365_v24  ;;  %1325 = vmatmul.mubr.msk.bf16.gmra.mxu1 %vm261_vm2, %v1366_v25 }
  0x2e   :  { %1296 = vmatprep.mubr.msk.bf16.mxu0 %vm261_vm2, %v1367_v26  ;;  %1328 = vmatprep.mubr.msk.bf16.mxu1 %vm261_vm2, %v1368_v27 }
  0x35   :  { %1297 = vmatmul.mubr.msk.bf16.gmra.mxu0 %vm261_vm2, %v1369_v28  ;;  %1329 = vmatmul.mubr.msk.bf16.gmra.mxu1 %vm261_vm2, %v1370_v29 }
  0x36   :  { %1300 = vmatprep.mubr.msk.bf16.mxu0 %vm261_vm2, %v1371_v30  ;;  %1332 = vmatprep.mubr.msk.bf16.mxu1 %vm261_vm2, %v1372_v31 }
  0x3d   :  { %1301 = vmatmul.mubr.msk.bf16.gmra.mxu0 %vm261_vm2, %v1373_v32  ;;  %1333 = vmatmul.mubr.msk.bf16.gmra.mxu1 %vm261_vm2, %v1374_v33 }
  0x3e   :  { %1304 = vmatprep.mubr.msk.bf16.mxu0 %vm261_vm2, %v1375_v34  ;;  %1336 = vmatprep.mubr.msk.bf16.mxu1 %vm261_vm2, %v1376_v35 }
  0x45   :  { %1305 = vmatmul.mubr.msk.bf16.gmra.mxu0 %vm261_vm2, %v1377_v36  ;;  %1337 = vmatmul.mubr.msk.bf16.gmra.mxu1 %vm261_vm2, %v1378_v37 }
  0xcd   :  { %v1278_v39 = vpop.f32.mrf.mxu0  ;;  %v1310_v40 = vpop.f32.mrf.mxu1 }
  0xce   :  { %v408_v41 = vadd.f32 %v1278_v39, %v1537_v38  ;;  %v536_v42 = vadd.f32 %v1310_v40, %v1537_v38 }
  0xcf   :  { %v399_v43 = vpop.f32.mrf.mxu0  ;;  %v527_v44 = vpop.f32.mrf.mxu1 }
  0xd0   :  { %v656_v45 = vmax.f32 %v408_v41, 0.0  ;;  %v688_v46 = vmax.f32 %v536_v42, 0.0  ;;  %v400_v47 = vadd.f32 %v1537_v38, %v399_v43  ;;  %v528_v48 = vadd.f32 %v1537_v38, %v527_v44 }
  0xd1   :  { %v1279_v49 = vpop.f32.mrf.mxu0  ;;  %v1311_v50 = vpop.f32.mrf.mxu1 }
  0xd2   :  { %v1176_v51 = vpack.c.bf16 %v656_v45, %v656_v45  ;;  %v1208_v52 = vpack.c.bf16 %v688_v46, %v688_v46  ;;  %v654_v53 = vmax.f32 %v400_v47, 0.0  ;;  %v686_v54 = vmax.f32 %v528_v48, 0.0 }
  0xd3   :  { %v411_v55 = vadd.f32 %v1279_v49, %v1537_v38  ;;  %v539_v56 = vadd.f32 %v1311_v50, %v1537_v38  ;;  %v402_v57 = vpop.f32.mrf.mxu0  ;;  %v530_v58 = vpop.f32.mrf.mxu1 }
  0xd4   :  { %977 = vst.msk [vmem:[%s1862_s3 + $0x8] sm:$0xf] %vm974_vm3, %v1176_v51  ;;  %1009 = vst.msk [vmem:[%s1862_s3 + $0x88] sm:$0xf] %vm974_vm3, %v1208_v52  ;;  %v1174_v59 = vpack.c.bf16 %v654_v53, %v654_v53  ;;  %v1206_v60 = vpack.c.bf16 %v686_v54, %v686_v54  ;;  %v403_v61 = vadd.f32 %v1537_v38, %v402_v57 }
  0xd5   :  { %v531_v62 = vadd.f32 %v1537_v38, %v530_v58  ;;  %v657_v63 = vmax.f32 %v411_v55, 0.0  ;;  %v689_v0 = vmax.f32 %v539_v56, 0.0  ;;  %v1282_v1 = vpop.f32.mrf.mxu0  ;;  %v1314_v2 = vpop.f32.mrf.mxu1 }
  0xd6   :  { %975 = vst.msk [vmem:[%s1862_s3] sm:$0xf] %vm974_vm3, %v1174_v59  ;;  %1007 = vst.msk [vmem:[%s1862_s3 + $0x80] sm:$0xf] %vm974_vm3, %v1206_v60  ;;  %v655_v3 = vmax.f32 %v403_v61, 0.0  ;;  %v424_v5 = vadd.f32 %v1282_v1, %v1537_v38  ;;  %v552_v6 = vadd.f32 %v1314_v2, %v1537_v38 }
  0xd7   :  { %v687_v4 = vmax.f32 %v531_v62, 0.0  ;;  %v1177_v7 = vpack.c.bf16 %v657_v63, %v657_v63  ;;  %v1209_v8 = vpack.c.bf16 %v689_v0, %v689_v0  ;;  %v415_v9 = vpop.f32.mrf.mxu0  ;;  %v543_v10 = vpop.f32.mrf.mxu1 }
  0xd8   :  { %v1175_v11 = vpack.c.bf16 %v655_v3, %v655_v3  ;;  %v660_v13 = vmax.f32 %v424_v5, 0.0  ;;  %v692_v14 = vmax.f32 %v552_v6, 0.0  ;;  %v416_v15 = vadd.f32 %v1537_v38, %v415_v9 }
  0xd9   :  { %v1207_v12 = vpack.c.bf16 %v687_v4, %v687_v4  ;;  %978 = vst.msk [vmem:[%s1862_s3 + $0xc] sm:$0xf] %vm974_vm3, %v1177_v7  ;;  %1010 = vst.msk [vmem:[%s1862_s3 + $0x8c] sm:$0xf] %vm974_vm3, %v1209_v8  ;;  %v544_v16 = vadd.f32 %v1537_v38, %v543_v10  ;;  %v1283_v17 = vpop.f32.mrf.mxu0  ;;  %v1315_v18 = vpop.f32.mrf.mxu1 }
  0xda   :  { %976 = vst.msk [vmem:[%s1862_s3 + $0x4] sm:$0xf] %vm974_vm3, %v1175_v11  ;;  %v1180_v19 = vpack.c.bf16 %v660_v13, %v660_v13  ;;  %v1212_v20 = vpack.c.bf16 %v692_v14, %v692_v14  ;;  %v427_v21 = vadd.f32 %v1283_v17, %v1537_v38  ;;  %v555_v22 = vadd.f32 %v1315_v18, %v1537_v38 }
  0xdb   :  { %1008 = vst.msk [vmem:[%s1862_s3 + $0x84] sm:$0xf] %vm974_vm3, %v1207_v12  ;;  %v658_v23 = vmax.f32 %v416_v15, 0.0  ;;  %v690_v24 = vmax.f32 %v544_v16, 0.0  ;;  %v418_v25 = vpop.f32.mrf.mxu0  ;;  %v546_v26 = vpop.f32.mrf.mxu1 }
  0xdc   :  { %981 = vst.msk [vmem:[%s1862_s3 + $0x18] sm:$0xf] %vm974_vm3, %v1180_v19  ;;  %1013 = vst.msk [vmem:[%s1862_s3 + $0x98] sm:$0xf] %vm974_vm3, %v1212_v20  ;;  %v661_v27 = vmax.f32 %v427_v21, 0.0  ;;  %v693_v28 = vmax.f32 %v555_v22, 0.0  ;;  %v419_v29 = vadd.f32 %v1537_v38, %v418_v25  ;;  %v547_v30 = vadd.f32 %v1537_v38, %v546_v26 }
  0xdd   :  { %v1178_v31 = vpack.c.bf16 %v658_v23, %v658_v23  ;;  %v1210_v32 = vpack.c.bf16 %v690_v24, %v690_v24  ;;  %v1286_v33 = vpop.f32.mrf.mxu0  ;;  %v1318_v34 = vpop.f32.mrf.mxu1 }
  0xde   :  { %v1181_v35 = vpack.c.bf16 %v661_v27, %v661_v27  ;;  %v1213_v36 = vpack.c.bf16 %v693_v28, %v693_v28  ;;  %v659_v37 = vmax.f32 %v419_v29, 0.0  ;;  %v691_v39 = vmax.f32 %v547_v30, 0.0 }
  0xdf   :  { %979 = vst.msk [vmem:[%s1862_s3 + $0x10] sm:$0xf] %vm974_vm3, %v1178_v31  ;;  %1011 = vst.msk [vmem:[%s1862_s3 + $0x90] sm:$0xf] %vm974_vm3, %v1210_v32  ;;  %v440_v40 = vadd.f32 %v1286_v33, %v1537_v38  ;;  %v568_v41 = vadd.f32 %v1318_v34, %v1537_v38  ;;  %v431_v42 = vpop.f32.mrf.mxu0  ;;  %v559_v43 = vpop.f32.mrf.mxu1 }
  0xe0   :  { %982 = vst.msk [vmem:[%s1862_s3 + $0x1c] sm:$0xf] %vm974_vm3, %v1181_v35  ;;  %1014 = vst.msk [vmem:[%s1862_s3 + $0x9c] sm:$0xf] %vm974_vm3, %v1213_v36  ;;  %v1179_v44 = vpack.c.bf16 %v659_v37, %v659_v37  ;;  %v1211_v45 = vpack.c.bf16 %v691_v39, %v691_v39  ;;  %v432_v46 = vadd.f32 %v1537_v38, %v431_v42 }
  0xe1   :  { %v560_v47 = vadd.f32 %v1537_v38, %v559_v43  ;;  %v664_v48 = vmax.f32 %v440_v40, 0.0  ;;  %v696_v49 = vmax.f32 %v568_v41, 0.0  ;;  %v1287_v50 = vpop.f32.mrf.mxu0  ;;  %v1319_v51 = vpop.f32.mrf.mxu1 }
  0xe2   :  { %980 = vst.msk [vmem:[%s1862_s3 + $0x14] sm:$0xf] %vm974_vm3, %v1179_v44  ;;  %1012 = vst.msk [vmem:[%s1862_s3 + $0x94] sm:$0xf] %vm974_vm3, %v1211_v45  ;;  %v662_v52 = vmax.f32 %v432_v46, 0.0  ;;  %v443_v54 = vadd.f32 %v1287_v50, %v1537_v38  ;;  %v571_v55 = vadd.f32 %v1319_v51, %v1537_v38 }
  0xe3   :  { %v694_v53 = vmax.f32 %v560_v47, 0.0  ;;  %v1184_v56 = vpack.c.bf16 %v664_v48, %v664_v48  ;;  %v1216_v57 = vpack.c.bf16 %v696_v49, %v696_v49  ;;  %v434_v58 = vpop.f32.mrf.mxu0  ;;  %v562_v59 = vpop.f32.mrf.mxu1 }
  0xe4   :  { %v1182_v60 = vpack.c.bf16 %v662_v52, %v662_v52  ;;  %v665_v62 = vmax.f32 %v443_v54, 0.0  ;;  %v697_v63 = vmax.f32 %v571_v55, 0.0  ;;  %v435_v0 = vadd.f32 %v1537_v38, %v434_v58 }
  0xe5   :  { %v1214_v61 = vpack.c.bf16 %v694_v53, %v694_v53  ;;  %985 = vst.msk [vmem:[%s1862_s3 + $0x28] sm:$0xf] %vm974_vm3, %v1184_v56  ;;  %1017 = vst.msk [vmem:[%s1862_s3 + $0xa8] sm:$0xf] %vm974_vm3, %v1216_v57  ;;  %v563_v1 = vadd.f32 %v1537_v38, %v562_v59  ;;  %v1290_v2 = vpop.f32.mrf.mxu0  ;;  %v1322_v3 = vpop.f32.mrf.mxu1 }
  0xe6   :  { %983 = vst.msk [vmem:[%s1862_s3 + $0x20] sm:$0xf] %vm974_vm3, %v1182_v60  ;;  %v1185_v4 = vpack.c.bf16 %v665_v62, %v665_v62  ;;  %v1217_v5 = vpack.c.bf16 %v697_v63, %v697_v63  ;;  %v456_v6 = vadd.f32 %v1290_v2, %v1537_v38  ;;  %v584_v7 = vadd.f32 %v1322_v3, %v1537_v38 }
  0xe7   :  { %1015 = vst.msk [vmem:[%s1862_s3 + $0xa0] sm:$0xf] %vm974_vm3, %v1214_v61  ;;  %v663_v8 = vmax.f32 %v435_v0, 0.0  ;;  %v695_v9 = vmax.f32 %v563_v1, 0.0  ;;  %v447_v10 = vpop.f32.mrf.mxu0  ;;  %v575_v11 = vpop.f32.mrf.mxu1 }
  0xe8   :  { %986 = vst.msk [vmem:[%s1862_s3 + $0x2c] sm:$0xf] %vm974_vm3, %v1185_v4  ;;  %1018 = vst.msk [vmem:[%s1862_s3 + $0xac] sm:$0xf] %vm974_vm3, %v1217_v5  ;;  %v668_v12 = vmax.f32 %v456_v6, 0.0  ;;  %v700_v13 = vmax.f32 %v584_v7, 0.0  ;;  %v448_v14 = vadd.f32 %v1537_v38, %v447_v10  ;;  %v576_v15 = vadd.f32 %v1537_v38, %v575_v11 }
  0xe9   :  { %v1183_v16 = vpack.c.bf16 %v663_v8, %v663_v8  ;;  %v1215_v17 = vpack.c.bf16 %v695_v9, %v695_v9  ;;  %v1291_v18 = vpop.f32.mrf.mxu0  ;;  %v1323_v19 = vpop.f32.mrf.mxu1 }
  0xea   :  { %v1188_v20 = vpack.c.bf16 %v668_v12, %v668_v12  ;;  %v1220_v21 = vpack.c.bf16 %v700_v13, %v700_v13  ;;  %v666_v22 = vmax.f32 %v448_v14, 0.0  ;;  %v698_v23 = vmax.f32 %v576_v15, 0.0 }
  0xeb   :  { %984 = vst.msk [vmem:[%s1862_s3 + $0x24] sm:$0xf] %vm974_vm3, %v1183_v16  ;;  %1016 = vst.msk [vmem:[%s1862_s3 + $0xa4] sm:$0xf] %vm974_vm3, %v1215_v17  ;;  %v459_v24 = vadd.f32 %v1291_v18, %v1537_v38  ;;  %v587_v25 = vadd.f32 %v1323_v19, %v1537_v38  ;;  %v450_v26 = vpop.f32.mrf.mxu0  ;;  %v578_v27 = vpop.f32.mrf.mxu1 }
  0xec   :  { %989 = vst.msk [vmem:[%s1862_s3 + $0x38] sm:$0xf] %vm974_vm3, %v1188_v20  ;;  %1021 = vst.msk [vmem:[%s1862_s3 + $0xb8] sm:$0xf] %vm974_vm3, %v1220_v21  ;;  %v1186_v28 = vpack.c.bf16 %v666_v22, %v666_v22  ;;  %v1218_v29 = vpack.c.bf16 %v698_v23, %v698_v23  ;;  %v451_v30 = vadd.f32 %v1537_v38, %v450_v26 }
  0xed   :  { %v579_v31 = vadd.f32 %v1537_v38, %v578_v27  ;;  %v669_v32 = vmax.f32 %v459_v24, 0.0  ;;  %v701_v33 = vmax.f32 %v587_v25, 0.0  ;;  %v1294_v34 = vpop.f32.mrf.mxu0  ;;  %v1326_v35 = vpop.f32.mrf.mxu1 }
  0xee   :  { %987 = vst.msk [vmem:[%s1862_s3 + $0x30] sm:$0xf] %vm974_vm3, %v1186_v28  ;;  %1019 = vst.msk [vmem:[%s1862_s3 + $0xb0] sm:$0xf] %vm974_vm3, %v1218_v29  ;;  %v667_v36 = vmax.f32 %v451_v30, 0.0  ;;  %v472_v39 = vadd.f32 %v1294_v34, %v1537_v38  ;;  %v600_v40 = vadd.f32 %v1326_v35, %v1537_v38 }
  0xef   :  { %v699_v37 = vmax.f32 %v579_v31, 0.0  ;;  %v1189_v41 = vpack.c.bf16 %v669_v32, %v669_v32  ;;  %v1221_v42 = vpack.c.bf16 %v701_v33, %v701_v33  ;;  %v463_v43 = vpop.f32.mrf.mxu0  ;;  %v591_v44 = vpop.f32.mrf.mxu1 }
  0xf0   :  { %v1187_v45 = vpack.c.bf16 %v667_v36, %v667_v36  ;;  %v672_v47 = vmax.f32 %v472_v39, 0.0  ;;  %v704_v48 = vmax.f32 %v600_v40, 0.0  ;;  %v464_v49 = vadd.f32 %v1537_v38, %v463_v43 }
  0xf1   :  { %v1219_v46 = vpack.c.bf16 %v699_v37, %v699_v37  ;;  %990 = vst.msk [vmem:[%s1862_s3 + $0x3c] sm:$0xf] %vm974_vm3, %v1189_v41  ;;  %1022 = vst.msk [vmem:[%s1862_s3 + $0xbc] sm:$0xf] %vm974_vm3, %v1221_v42  ;;  %v592_v50 = vadd.f32 %v1537_v38, %v591_v44  ;;  %v1295_v51 = vpop.f32.mrf.mxu0  ;;  %v1327_v52 = vpop.f32.mrf.mxu1 }
  0xf2   :  { %988 = vst.msk [vmem:[%s1862_s3 + $0x34] sm:$0xf] %vm974_vm3, %v1187_v45  ;;  %v1192_v53 = vpack.c.bf16 %v672_v47, %v672_v47  ;;  %v1224_v54 = vpack.c.bf16 %v704_v48, %v704_v48  ;;  %v475_v55 = vadd.f32 %v1295_v51, %v1537_v38  ;;  %v603_v56 = vadd.f32 %v1327_v52, %v1537_v38 }
  0xf3   :  { %1020 = vst.msk [vmem:[%s1862_s3 + $0xb4] sm:$0xf] %vm974_vm3, %v1219_v46  ;;  %v670_v57 = vmax.f32 %v464_v49, 0.0  ;;  %v702_v58 = vmax.f32 %v592_v50, 0.0  ;;  %v466_v59 = vpop.f32.mrf.mxu0  ;;  %v594_v60 = vpop.f32.mrf.mxu1 }
  0xf4   :  { %993 = vst.msk [vmem:[%s1862_s3 + $0x48] sm:$0xf] %vm974_vm3, %v1192_v53  ;;  %1025 = vst.msk [vmem:[%s1862_s3 + $0xc8] sm:$0xf] %vm974_vm3, %v1224_v54  ;;  %v673_v61 = vmax.f32 %v475_v55, 0.0  ;;  %v705_v62 = vmax.f32 %v603_v56, 0.0  ;;  %v467_v63 = vadd.f32 %v1537_v38, %v466_v59  ;;  %v595_v0 = vadd.f32 %v1537_v38, %v594_v60 }
  0xf5   :  { %v1190_v1 = vpack.c.bf16 %v670_v57, %v670_v57  ;;  %v1222_v2 = vpack.c.bf16 %v702_v58, %v702_v58  ;;  %v1298_v3 = vpop.f32.mrf.mxu0  ;;  %v1330_v4 = vpop.f32.mrf.mxu1 }
  0xf6   :  { %v1193_v5 = vpack.c.bf16 %v673_v61, %v673_v61  ;;  %v1225_v6 = vpack.c.bf16 %v705_v62, %v705_v62  ;;  %v671_v7 = vmax.f32 %v467_v63, 0.0  ;;  %v703_v8 = vmax.f32 %v595_v0, 0.0 }
  0xf7   :  { %991 = vst.msk [vmem:[%s1862_s3 + $0x40] sm:$0xf] %vm974_vm3, %v1190_v1  ;;  %1023 = vst.msk [vmem:[%s1862_s3 + $0xc0] sm:$0xf] %vm974_vm3, %v1222_v2  ;;  %v488_v9 = vadd.f32 %v1298_v3, %v1537_v38  ;;  %v616_v10 = vadd.f32 %v1330_v4, %v1537_v38  ;;  %v479_v11 = vpop.f32.mrf.mxu0  ;;  %v607_v12 = vpop.f32.mrf.mxu1 }
  0xf8   :  { %994 = vst.msk [vmem:[%s1862_s3 + $0x4c] sm:$0xf] %vm974_vm3, %v1193_v5  ;;  %1026 = vst.msk [vmem:[%s1862_s3 + $0xcc] sm:$0xf] %vm974_vm3, %v1225_v6  ;;  %v1191_v13 = vpack.c.bf16 %v671_v7, %v671_v7  ;;  %v1223_v14 = vpack.c.bf16 %v703_v8, %v703_v8  ;;  %v480_v15 = vadd.f32 %v1537_v38, %v479_v11 }
  0xf9   :  { %v608_v16 = vadd.f32 %v1537_v38, %v607_v12  ;;  %v676_v17 = vmax.f32 %v488_v9, 0.0  ;;  %v708_v18 = vmax.f32 %v616_v10, 0.0  ;;  %v1299_v19 = vpop.f32.mrf.mxu0  ;;  %v1331_v20 = vpop.f32.mrf.mxu1 }
  0xfa   :  { %992 = vst.msk [vmem:[%s1862_s3 + $0x44] sm:$0xf] %vm974_vm3, %v1191_v13  ;;  %1024 = vst.msk [vmem:[%s1862_s3 + $0xc4] sm:$0xf] %vm974_vm3, %v1223_v14  ;;  %v674_v21 = vmax.f32 %v480_v15, 0.0  ;;  %v491_v23 = vadd.f32 %v1299_v19, %v1537_v38  ;;  %v619_v24 = vadd.f32 %v1331_v20, %v1537_v38 }
  0xfb   :  { %v706_v22 = vmax.f32 %v608_v16, 0.0  ;;  %v1196_v25 = vpack.c.bf16 %v676_v17, %v676_v17  ;;  %v1228_v26 = vpack.c.bf16 %v708_v18, %v708_v18  ;;  %v482_v27 = vpop.f32.mrf.mxu0  ;;  %v610_v28 = vpop.f32.mrf.mxu1 }
  0xfc   :  { %v1194_v29 = vpack.c.bf16 %v674_v21, %v674_v21  ;;  %v677_v31 = vmax.f32 %v491_v23, 0.0  ;;  %v709_v32 = vmax.f32 %v619_v24, 0.0  ;;  %v483_v33 = vadd.f32 %v1537_v38, %v482_v27 }
  0xfd   :  { %v1226_v30 = vpack.c.bf16 %v706_v22, %v706_v22  ;;  %997 = vst.msk [vmem:[%s1862_s3 + $0x58] sm:$0xf] %vm974_vm3, %v1196_v25  ;;  %1029 = vst.msk [vmem:[%s1862_s3 + $0xd8] sm:$0xf] %vm974_vm3, %v1228_v26  ;;  %v611_v34 = vadd.f32 %v1537_v38, %v610_v28  ;;  %v1302_v35 = vpop.f32.mrf.mxu0  ;;  %v1334_v36 = vpop.f32.mrf.mxu1 }
  0xfe   :  { %995 = vst.msk [vmem:[%s1862_s3 + $0x50] sm:$0xf] %vm974_vm3, %v1194_v29  ;;  %v1197_v37 = vpack.c.bf16 %v677_v31, %v677_v31  ;;  %v1229_v39 = vpack.c.bf16 %v709_v32, %v709_v32  ;;  %v504_v40 = vadd.f32 %v1302_v35, %v1537_v38  ;;  %v632_v41 = vadd.f32 %v1334_v36, %v1537_v38 }
  0xff   :  { %1027 = vst.msk [vmem:[%s1862_s3 + $0xd0] sm:$0xf] %vm974_vm3, %v1226_v30  ;;  %v675_v42 = vmax.f32 %v483_v33, 0.0  ;;  %v707_v43 = vmax.f32 %v611_v34, 0.0  ;;  %v495_v44 = vpop.f32.mrf.mxu0  ;;  %v623_v45 = vpop.f32.mrf.mxu1 }
 0x100   :  { %998 = vst.msk [vmem:[%s1862_s3 + $0x5c] sm:$0xf] %vm974_vm3, %v1197_v37  ;;  %1030 = vst.msk [vmem:[%s1862_s3 + $0xdc] sm:$0xf] %vm974_vm3, %v1229_v39  ;;  %v680_v46 = vmax.f32 %v504_v40, 0.0  ;;  %v712_v47 = vmax.f32 %v632_v41, 0.0  ;;  %v496_v48 = vadd.f32 %v1537_v38, %v495_v44  ;;  %v624_v49 = vadd.f32 %v1537_v38, %v623_v45 }
 0x101   :  { %v1195_v50 = vpack.c.bf16 %v675_v42, %v675_v42  ;;  %v1227_v51 = vpack.c.bf16 %v707_v43, %v707_v43  ;;  %v1303_v52 = vpop.f32.mrf.mxu0  ;;  %v1335_v53 = vpop.f32.mrf.mxu1 }
 0x102   :  { %v1200_v54 = vpack.c.bf16 %v680_v46, %v680_v46  ;;  %v1232_v55 = vpack.c.bf16 %v712_v47, %v712_v47  ;;  %v678_v56 = vmax.f32 %v496_v48, 0.0  ;;  %v710_v57 = vmax.f32 %v624_v49, 0.0 }
 0x103   :  { %996 = vst.msk [vmem:[%s1862_s3 + $0x54] sm:$0xf] %vm974_vm3, %v1195_v50  ;;  %1028 = vst.msk [vmem:[%s1862_s3 + $0xd4] sm:$0xf] %vm974_vm3, %v1227_v51  ;;  %v507_v58 = vadd.f32 %v1303_v52, %v1537_v38  ;;  %v635_v59 = vadd.f32 %v1335_v53, %v1537_v38  ;;  %v498_v60 = vpop.f32.mrf.mxu0  ;;  %v626_v61 = vpop.f32.mrf.mxu1 }
 0x104   :  { %1001 = vst.msk [vmem:[%s1862_s3 + $0x68] sm:$0xf] %vm974_vm3, %v1200_v54  ;;  %1033 = vst.msk [vmem:[%s1862_s3 + $0xe8] sm:$0xf] %vm974_vm3, %v1232_v55  ;;  %v1198_v62 = vpack.c.bf16 %v678_v56, %v678_v56  ;;  %v1230_v63 = vpack.c.bf16 %v710_v57, %v710_v57  ;;  %v499_v0 = vadd.f32 %v1537_v38, %v498_v60 }
 0x105   :  { %v627_v1 = vadd.f32 %v1537_v38, %v626_v61  ;;  %v681_v2 = vmax.f32 %v507_v58, 0.0  ;;  %v713_v3 = vmax.f32 %v635_v59, 0.0  ;;  %v1306_v4 = vpop.f32.mrf.mxu0  ;;  %v1338_v5 = vpop.f32.mrf.mxu1 }
 0x106   :  { %999 = vst.msk [vmem:[%s1862_s3 + $0x60] sm:$0xf] %vm974_vm3, %v1198_v62  ;;  %1031 = vst.msk [vmem:[%s1862_s3 + $0xe0] sm:$0xf] %vm974_vm3, %v1230_v63  ;;  %v679_v6 = vmax.f32 %v499_v0, 0.0  ;;  %v520_v8 = vadd.f32 %v1306_v4, %v1537_v38  ;;  %v648_v9 = vadd.f32 %v1338_v5, %v1537_v38 }
 0x107   :  { %v711_v7 = vmax.f32 %v627_v1, 0.0  ;;  %v1201_v10 = vpack.c.bf16 %v681_v2, %v681_v2  ;;  %v1233_v11 = vpack.c.bf16 %v713_v3, %v713_v3  ;;  %v511_v12 = vpop.f32.mrf.mxu0  ;;  %v639_v13 = vpop.f32.mrf.mxu1 }
 0x108   :  { %v1199_v14 = vpack.c.bf16 %v679_v6, %v679_v6  ;;  %v684_v16 = vmax.f32 %v520_v8, 0.0  ;;  %v716_v17 = vmax.f32 %v648_v9, 0.0  ;;  %v512_v18 = vadd.f32 %v1537_v38, %v511_v12 }
 0x109   :  { %v1231_v15 = vpack.c.bf16 %v711_v7, %v711_v7  ;;  %1002 = vst.msk [vmem:[%s1862_s3 + $0x6c] sm:$0xf] %vm974_vm3, %v1201_v10  ;;  %1034 = vst.msk [vmem:[%s1862_s3 + $0xec] sm:$0xf] %vm974_vm3, %v1233_v11  ;;  %v640_v19 = vadd.f32 %v1537_v38, %v639_v13  ;;  %v1307_v20 = vpop.f32.mrf.mxu0  ;;  %v1339_v21 = vpop.f32.mrf.mxu1 }
 0x10a   :  { %1000 = vst.msk [vmem:[%s1862_s3 + $0x64] sm:$0xf] %vm974_vm3, %v1199_v14  ;;  %v1204_v22 = vpack.c.bf16 %v684_v16, %v684_v16  ;;  %v1236_v23 = vpack.c.bf16 %v716_v17, %v716_v17  ;;  %v523_v24 = vadd.f32 %v1307_v20, %v1537_v38  ;;  %v651_v25 = vadd.f32 %v1339_v21, %v1537_v38 }
 0x10b   :  { %1032 = vst.msk [vmem:[%s1862_s3 + $0xe4] sm:$0xf] %vm974_vm3, %v1231_v15  ;;  %v682_v26 = vmax.f32 %v512_v18, 0.0  ;;  %v714_v27 = vmax.f32 %v640_v19, 0.0  ;;  %v514_v28 = vpop.f32.mrf.mxu0  ;;  %v642_v29 = vpop.f32.mrf.mxu1 }
 0x10c   :  { %1005 = vst.msk [vmem:[%s1862_s3 + $0x78] sm:$0xf] %vm974_vm3, %v1204_v22  ;;  %1037 = vst.msk [vmem:[%s1862_s3 + $0xf8] sm:$0xf] %vm974_vm3, %v1236_v23  ;;  %v685_v30 = vmax.f32 %v523_v24, 0.0  ;;  %v717_v31 = vmax.f32 %v651_v25, 0.0  ;;  %v515_v32 = vadd.f32 %v1537_v38, %v514_v28  ;;  %v643_v33 = vadd.f32 %v1537_v38, %v642_v29 }
 0x10d   :  { %v1202_v34 = vpack.c.bf16 %v682_v26, %v682_v26  ;;  %v1234_v35 = vpack.c.bf16 %v714_v27, %v714_v27 }
 0x10e   :  { %v1205_v36 = vpack.c.bf16 %v685_v30, %v685_v30  ;;  %v1237_v37 = vpack.c.bf16 %v717_v31, %v717_v31  ;;  %v683_v39 = vmax.f32 %v515_v32, 0.0  ;;  %v715_v40 = vmax.f32 %v643_v33, 0.0 }
 0x10f   :  { %1003 = vst.msk [vmem:[%s1862_s3 + $0x70] sm:$0xf] %vm974_vm3, %v1202_v34  ;;  %1035 = vst.msk [vmem:[%s1862_s3 + $0xf0] sm:$0xf] %vm974_vm3, %v1234_v35 }
 0x110   :  { %1006 = vst.msk [vmem:[%s1862_s3 + $0x7c] sm:$0xf] %vm974_vm3, %v1205_v36  ;;  %1038 = vst.msk [vmem:[%s1862_s3 + $0xfc] sm:$0xf] %vm974_vm3, %v1237_v37  ;;  %v1203_v38 = vpack.c.bf16 %v683_v39, %v683_v39  ;;  %v1235_v41 = vpack.c.bf16 %v715_v40, %v715_v40 }
 0x112   :  { %1004 = vst.msk [vmem:[%s1862_s3 + $0x74] sm:$0xf] %vm974_vm3, %v1203_v38  ;;  %1036 = vst.msk [vmem:[%s1862_s3 + $0xf4] sm:$0xf] %vm974_vm3, %v1235_v41 }

// kernel: stem_fwd.3
= control target key start
LH: loop header
LB: loop body
LE: loop exit
PB: predicated region body
PF: predicated region fallthrough
CT: control target
= control target key end

     0   :  { %s1768_s0 = inlined_call_operand.vmem [shape: bf16[128,576], index: 0, kind: input, shape index: {}]   ;;  %s1769_s1 = inlined_call_operand.vmem [shape: bf16[576,64], index: 1, kind: input, shape index: {}]   ;;  %s1770_s2 = inlined_call_operand.vmem [shape: f32[1,64], index: 2, kind: input, shape index: {}]   ;;  %s1771_s3 = inlined_call_operand.hbm [shape: bf16[128,64], index: 3, kind: output, shape index: {}]  }
   0x1   :  { %v1280_v0 = vld [vmem:[%s1769_s1 + $0x78] sm:$0xff]   ;;  %v1284_v4 = vld [vmem:[%s1769_s1 + $0x70] sm:$0xff]   ;;  %v1288_v8 = vld [vmem:[%s1769_s1 + $0x68] sm:$0xff]  }
   0x2   :  { %v1281_v1 = vld [vmem:[%s1769_s1 + $0xf8] sm:$0xff]   ;;  %1105 = vmatprep.subr.bf16.mxu0 %v1280_v0  ;;  %v1285_v5 = vld [vmem:[%s1769_s1 + $0xf0] sm:$0xff]   ;;  %v1289_v9 = vld [vmem:[%s1769_s1 + $0xe8] sm:$0xff]  }
   0x3   :  { %v1282_v2 = vld [vmem:[%s1769_s1 + $0x38] sm:$0xff]   ;;  %1169 = vmatprep.subr.bf16.mxu1 %v1281_v1  ;;  %v1286_v6 = vld [vmem:[%s1769_s1 + $0x30] sm:$0xff]   ;;  %v1290_v10 = vld [vmem:[%s1769_s1 + $0x28] sm:$0xff]  }
   0x4   :  { %v1283_v3 = vld [vmem:[%s1769_s1 + $0xb8] sm:$0xff]   ;;  %1106 = vmatpush3.bf16.msra.mxu0 %v1282_v2  ;;  %v1287_v7 = vld [vmem:[%s1769_s1 + $0xb0] sm:$0xff]   ;;  %v1291_v11 = vld [vmem:[%s1769_s1 + $0xa8] sm:$0xff]  }
   0x5   :  { %1170 = vmatpush3.bf16.msra.mxu1 %v1283_v3  ;;  %1107 = vmatprep.subr.bf16.mxu0 %v1284_v4  ;;  %v1292_v12 = vld [vmem:[%s1769_s1 + $0x60] sm:$0xff]   ;;  %v1296_v16 = vld [vmem:[%s1769_s1 + $0x58] sm:$0xff]   ;;  %v1300_v20 = vld [vmem:[%s1769_s1 + $0x50] sm:$0xff]  }
   0x6   :  { %1171 = vmatprep.subr.bf16.mxu1 %v1285_v5  ;;  %v1293_v13 = vld [vmem:[%s1769_s1 + $0xe0] sm:$0xff]   ;;  %v1297_v17 = vld [vmem:[%s1769_s1 + $0xd8] sm:$0xff]   ;;  %v1301_v21 = vld [vmem:[%s1769_s1 + $0xd0] sm:$0xff]  }
   0x7   :  { %v1294_v14 = vld [vmem:[%s1769_s1 + $0x20] sm:$0xff]   ;;  %v1298_v18 = vld [vmem:[%s1769_s1 + $0x18] sm:$0xff]   ;;  %v1302_v22 = vld [vmem:[%s1769_s1 + $0x10] sm:$0xff]  }
   0x8   :  { %1108 = vmatpush3.bf16.msra.mxu0 %v1286_v6  ;;  %v1295_v15 = vld [vmem:[%s1769_s1 + $0xa0] sm:$0xff]   ;;  %v1299_v19 = vld [vmem:[%s1769_s1 + $0x98] sm:$0xff]   ;;  %v1303_v23 = vld [vmem:[%s1769_s1 + $0x90] sm:$0xff]  }
   0x9   :  { %1172 = vmatpush3.bf16.msra.mxu1 %v1287_v7  ;;  %1109 = vmatprep.subr.bf16.mxu0 %v1288_v8  ;;  %v1304_v24 = vld [vmem:[%s1769_s1 + $0x48] sm:$0xff]   ;;  %v1308_v28 = vld [vmem:[%s1769_s1 + $0x40] sm:$0xff]   ;;  %v1318_v36 = vld [vmem:[%s1769_s1 + $0x118] sm:$0xff]  }
   0xa   :  { %1173 = vmatprep.subr.bf16.mxu1 %v1289_v9  ;;  %v1305_v25 = vld [vmem:[%s1769_s1 + $0xc8] sm:$0xff]   ;;  %v1309_v29 = vld [vmem:[%s1769_s1 + $0xc0] sm:$0xff]   ;;  %v1331_v42 = vld [vmem:[%s1769_s1 + $0x110] sm:$0xff]  }
   0xb   :  { %v1306_v26 = vld [vmem:[%s1769_s1 + $0x8] sm:$0xff]   ;;  %v1310_v30 = vld [vmem:[%s1769_s1] sm:$0xff]   ;;  %v1327_v43 = vld [vmem:[%s1768_s0 + $0x5c] ss:$20 sps:$4 sm:$0xff]  }
   0xc   :  { %1110 = vmatpush3.bf16.msra.mxu0 %v1290_v10  ;;  %v1307_v27 = vld [vmem:[%s1769_s1 + $0x88] sm:$0xff]   ;;  %v1311_v31 = vld [vmem:[%s1769_s1 + $0x80] sm:$0xff]   ;;  %v1332_v47 = vld [vmem:[%s1768_s0 + $0x7c] ss:$20 sps:$4 sm:$0xff]  }
   0xd   :  { %1174 = vmatpush3.bf16.msra.mxu1 %v1291_v11  ;;  %1111 = vmatprep.subr.bf16.mxu0 %v1292_v12  ;;  %v1312_v32 = vld [vmem:[%s1768_s0] ss:$20 sps:$4 sm:$0xff]   ;;  %v1314_v33 = vld [vmem:[%s1768_s0 + $0x4] ss:$20 sps:$4 sm:$0xff]   ;;  %v1315_v34 = vld [vmem:[%s1768_s0 + $0x8] ss:$20 sps:$4 sm:$0xff]  }
   0xe   :  { %1175 = vmatprep.subr.bf16.mxu1 %v1293_v13  ;;  %v1317_v35 = vld [vmem:[%s1768_s0 + $0xc] ss:$20 sps:$4 sm:$0xff]   ;;  %616 = vmatprep.mubr.bf16.mxu0 %v1314_v33  ;;  %v1321_v38 = vld [vmem:[%s1768_s0 + $0x34] ss:$20 sps:$4 sm:$0xff]   ;;  %v1324_v40 = vld [vmem:[%s1768_s0 + $0x30] ss:$20 sps:$4 sm:$0xff]  }
   0xf   :  { %713 = vmatprep.mubr.bf16.mxu1 %v1317_v35  ;;  %v1319_v37 = vld [vmem:[%s1768_s0 + $0x2c] ss:$20 sps:$4 sm:$0xff]   ;;  %v1323_v39 = vld [vmem:[%s1768_s0 + $0x28] ss:$20 sps:$4 sm:$0xff]   ;;  %v1329_v44 = vld [vmem:[%s1768_s0 + $0x50] ss:$20 sps:$4 sm:$0xff]  }
  0x10   :  { %1112 = vmatpush3.bf16.msra.mxu0 %v1294_v14  ;;  %v1325_v41 = vld [vmem:[%s1768_s0 + $0x54] ss:$20 sps:$4 sm:$0xff]   ;;  %v1330_v45 = vld [vmem:[%s1768_s0 + $0x58] ss:$20 sps:$4 sm:$0xff]   ;;  %v1357_v49 = vld [vmem:[%s1769_s1 + $0x100] sm:$0xff]  }
  0x11   :  { %1176 = vmatpush3.bf16.msra.mxu1 %v1295_v15  ;;  %1113 = vmatprep.subr.bf16.mxu0 %v1296_v16  ;;  %v1344_v46 = vld [vmem:[%s1769_s1 + $0x108] sm:$0xff]   ;;  %v1334_v48 = vld [vmem:[%s1768_s0 + $0x84] ss:$20 sps:$4 sm:$0xff]   ;;  %v1337_v51 = vld [vmem:[%s1768_s0 + $0x80] ss:$20 sps:$4 sm:$0xff]  }
  0x12   :  { %1177 = vmatprep.subr.bf16.mxu1 %v1297_v17  ;;  %v1336_v50 = vld [vmem:[%s1768_s0 + $0x78] ss:$20 sps:$4 sm:$0xff]   ;;  %v1342_v54 = vld [vmem:[%s1768_s0 + $0xa0] ss:$20 sps:$4 sm:$0xff]   ;;  %v1343_v55 = vld [vmem:[%s1768_s0 + $0xa8] ss:$20 sps:$4 sm:$0xff]  }
  0x13   :  { %v1338_v52 = vld [vmem:[%s1768_s0 + $0xa4] ss:$20 sps:$4 sm:$0xff]   ;;  %v1340_v53 = vld [vmem:[%s1768_s0 + $0xac] ss:$20 sps:$4 sm:$0xff]  }
  0x14   :  { %1114 = vmatpush3.bf16.msra.mxu0 %v1298_v18  ;;  %v1345_v56 = vld [vmem:[%s1768_s0 + $0xcc] ss:$20 sps:$4 sm:$0xff]  }
  0x15   :  { %1178 = vmatpush3.bf16.msra.mxu1 %v1299_v19  ;;  %1115 = vmatprep.subr.bf16.mxu0 %v1300_v20 }
  0x16   :  { %1179 = vmatprep.subr.bf16.mxu1 %v1301_v21 }
  0x18   :  { %1116 = vmatpush3.bf16.msra.mxu0 %v1302_v22 }
  0x19   :  { %1180 = vmatpush3.bf16.msra.mxu1 %v1303_v23  ;;  %1117 = vmatprep.subr.bf16.mxu0 %v1304_v24 }
  0x1a   :  { %1181 = vmatprep.subr.bf16.mxu1 %v1305_v25 }
  0x1c   :  { %1118 = vmatpush3.bf16.msra.mxu0 %v1306_v26 }
  0x1d   :  { %1182 = vmatpush3.bf16.msra.mxu1 %v1307_v27  ;;  %1119 = vmatprep.subr.bf16.mxu0 %v1308_v28 }
  0x1e   :  { %1183 = vmatprep.subr.bf16.mxu1 %v1309_v29 }
  0x20   :  { %1120 = vmatpush3.bf16.msra.mxu0 %v1310_v30 }
  0x21   :  { %1184 = vmatpush3.bf16.msra.mxu1 %v1311_v31  ;;  %1245 = vmatprep.subr.bf16.mxu0 %v1318_v36 }
  0x22   :  { %1269 = vmatprep.subr.bf16.mxu1 %v1318_v36 }
  0x23   :  { %617 = vmatmul.mubr.bf16.vlgmr.msra.gmra.mxu0 %v1312_v32 }
  0x24   :  { %714 = vmatmul.mubr.bf16.vlgmr.msra.gmra.mxu1 %v1315_v34  ;;  %1246 = vmatpush3.bf16.msra.mxu0 %v1318_v36 }
  0x25   :  { %1273 = vmatpush3.bf16.msra.mxu1 %v1318_v36  ;;  %624 = vmatprep.mubr.bf16.mxu0 %v1319_v37 }
  0x26   :  { %721 = vmatprep.mubr.bf16.mxu1 %v1321_v38  ;;  %1247 = vmatprep.subr.bf16.mxu0 %v1331_v42 }
  0x27   :  { %1270 = vmatprep.subr.bf16.mxu1 %v1331_v42 }
  0x28   :  { %1248 = vmatpush3.bf16.msra.mxu0 %v1331_v42 }
  0x29   :  { %1274 = vmatpush3.bf16.msra.mxu1 %v1331_v42  ;;  %1249 = vmatprep.subr.bf16.mxu0 %v1344_v46 }
  0x2a   :  { %1271 = vmatprep.subr.bf16.mxu1 %v1344_v46 }
  0x2b   :  { %625 = vmatmul.mubr.bf16.gmra.mxu0 %v1323_v39 }
  0x2c   :  { %722 = vmatmul.mubr.bf16.gmra.mxu1 %v1324_v40  ;;  %632 = vmatprep.mubr.bf16.mxu0 %v1325_v41 }
  0x2d   :  { %729 = vmatprep.mubr.bf16.mxu1 %v1327_v43  ;;  %1250 = vmatpush3.bf16.msra.mxu0 %v1344_v46 }
  0x2e   :  { %1275 = vmatpush3.bf16.msra.mxu1 %v1344_v46  ;;  %1251 = vmatprep.subr.bf16.mxu0 %v1357_v49 }
  0x2f   :  { %1272 = vmatprep.subr.bf16.mxu1 %v1357_v49 }
  0x31   :  { %1252 = vmatpush3.bf16.msra.mxu0 %v1357_v49 }
  0x32   :  { %1276 = vmatpush3.bf16.msra.mxu1 %v1357_v49 }
  0x33   :  { %633 = vmatmul.mubr.bf16.gmra.mxu0 %v1329_v44 }
  0x34   :  { %730 = vmatmul.mubr.bf16.gmra.mxu1 %v1330_v45  ;;  %640 = vmatprep.mubr.bf16.mxu0 %v1332_v47 }
  0x35   :  { %737 = vmatprep.mubr.bf16.mxu1 %v1334_v48 }
  0x3b   :  { %641 = vmatmul.mubr.bf16.gmra.mxu0 %v1336_v50 }
  0x3c   :  { %738 = vmatmul.mubr.bf16.gmra.mxu1 %v1337_v51  ;;  %648 = vmatprep.mubr.bf16.mxu0 %v1338_v52 }
  0x3d   :  { %745 = vmatprep.mubr.bf16.mxu1 %v1340_v53 }
  0x3e   :  { %8 = vsyncpa [#allocation3], 0  ;;  %v1347_v57 = vld [vmem:[%s1768_s0 + $0xd4] ss:$20 sps:$4 sm:$0xff]   ;;  %v1350_v59 = vld [vmem:[%s1768_s0 + $0xd0] ss:$20 sps:$4 sm:$0xff]  }
  0x3f   :  { %v1349_v58 = vld [vmem:[%s1768_s0 + $0xc8] ss:$20 sps:$4 sm:$0xff]   ;;  %v1355_v62 = vld [vmem:[%s1768_s0 + $0xf0] ss:$20 sps:$4 sm:$0xff]   ;;  %v1356_v63 = vld [vmem:[%s1768_s0 + $0xf8] ss:$20 sps:$4 sm:$0xff]  }
  0x40   :  { %v1351_v60 = vld [vmem:[%s1768_s0 + $0xf4] ss:$20 sps:$4 sm:$0xff]   ;;  %v1353_v61 = vld [vmem:[%s1768_s0 + $0xfc] ss:$20 sps:$4 sm:$0xff]   ;;  %v1360_v1 = vld [vmem:[%s1768_s0 + $0x124] ss:$20 sps:$4 sm:$0xff]  }
  0x41   :  { %v1358_v0 = vld [vmem:[%s1768_s0 + $0x11c] ss:$20 sps:$4 sm:$0xff]   ;;  %v1362_v2 = vld [vmem:[%s1768_s0 + $0x118] ss:$20 sps:$4 sm:$0xff]   ;;  %v1363_v3 = vld [vmem:[%s1768_s0 + $0x120] ss:$20 sps:$4 sm:$0xff]  }
  0x42   :  { %v1364_v4 = vld [vmem:[%s1768_s0 + $0x10] ss:$20 sps:$4 sm:$0xff]   ;;  %vm559_vm0 = vcmask 523264   ;;  %v1366_v6 = vld [vmem:[%s1768_s0 + $0x38] ss:$20 sps:$4 sm:$0xff]   ;;  %vm955_vm1 = vcmask 519168  }
  0x43   :  { %649 = vmatmul.mubr.bf16.gmra.mxu0 %v1342_v54  ;;  %v1365_v5 = vld [vmem:[%s1768_s0 + $0xb0] ss:$20 sps:$4 sm:$0xff]   ;;  %v1367_v7 = vld [vmem:[%s1768_s0 + $0xd8] ss:$20 sps:$4 sm:$0xff]   ;;  %v1368_v8 = vld [vmem:[%s1768_s0 + $0x60] ss:$20 sps:$4 sm:$0xff]  }
  0x44   :  { %746 = vmatmul.mubr.bf16.gmra.mxu1 %v1343_v55  ;;  %656 = vmatprep.mubr.bf16.mxu0 %v1345_v56  ;;  %v1369_v9 = vld [vmem:[%s1768_s0 + $0x100] ss:$20 sps:$4 sm:$0xff]   ;;  %v1370_v10 = vld [vmem:[%s1768_s0 + $0x88] ss:$20 sps:$4 sm:$0xff]  }
  0x45   :  { %753 = vmatprep.mubr.bf16.mxu1 %v1347_v57  ;;  %v1371_v11 = vld [vmem:[%s1768_s0 + $0x128] ss:$20 sps:$4 sm:$0xff]  }
  0x4b   :  { %657 = vmatmul.mubr.bf16.gmra.mxu0 %v1349_v58 }
  0x4c   :  { %754 = vmatmul.mubr.bf16.gmra.mxu1 %v1350_v59  ;;  %664 = vmatprep.mubr.bf16.mxu0 %v1351_v60 }
  0x4d   :  { %761 = vmatprep.mubr.bf16.mxu1 %v1353_v61 }
  0x53   :  { %665 = vmatmul.mubr.bf16.gmra.mxu0 %v1355_v62 }
  0x54   :  { %762 = vmatmul.mubr.bf16.gmra.mxu1 %v1356_v63  ;;  %672 = vmatprep.mubr.bf16.mxu0 %v1358_v0 }
  0x55   :  { %769 = vmatprep.mubr.bf16.mxu1 %v1360_v1 }
  0x5b   :  { %673 = vmatmul.mubr.bf16.gmra.mxu0 %v1362_v2 }
  0x5c   :  { %770 = vmatmul.mubr.bf16.gmra.mxu1 %v1363_v3  ;;  %1253 = vmatprep.mubr.msk.bf16.mxu0 %vm559_vm0, %v1364_v4  ;;  %v1688_v3 = vld [vmem:[%s1770_s2] ss:$0 sm:$0xff]  ;;  %s1394_s2 = smov [#allocation2]  }
  0x5d   :  { %1261 = vmatprep.mubr.msk.bf16.mxu1 %vm559_vm0, %v1365_v5  ;;  %s977_s28 = sshll.u32 %s1394_s2, 4  ;;  %s978_s28 = int_to_ptr.vmem [resolvable:$true] %s977_s28 }
  0x5e   :  { %s1372_s29 = scalar_lea.vmem %s978_s28, 1024  ;;  %p1377_p1 = scmp.lt.s32.totalorder %s978_s28, %s978_s28 }
  0x5f   :  { %p1373_p0 = scmp.ne.s32.totalorder %s978_s28, %s1372_s29  ;;  %p1378_p2 = scmp.lt.s32.totalorder %s1372_s29, %s1372_s29 }
  0x61   :  { %p1379_p3 = por %p1378_p2, %p1377_p1 }
  0x63   :  { %1254 = vmatmul.mubr.msk.bf16.vlgmr.msra.gmra.mxu0 %vm559_vm0, %v1366_v6  ;;  %p1380_p4 = pnand %p1379_p3, %p1373_p0 }
  0x64   :  { %1262 = vmatmul.mubr.msk.bf16.vlgmr.msra.gmra.mxu1 %vm559_vm0, %v1367_v7  ;;  %1257 = vmatprep.mubr.msk.bf16.mxu0 %vm559_vm0, %v1368_v8 }
  0x65   :  { %1265 = vmatprep.mubr.msk.bf16.mxu1 %vm559_vm0, %v1369_v9 }
  0x6b   :  { %1258 = vmatmul.mubr.msk.bf16.gmra.mxu0 %vm559_vm0, %v1370_v10 }
  0x6c   :  { %1266 = vmatmul.mubr.msk.bf16.gmra.mxu1 %vm559_vm0, %v1371_v11 }
  0xe3   :  { %v1121_v12 = vpop.f32.mrf.mxu0 }
  0xe4   :  { %v1185_v13 = vpop.f32.mrf.mxu1 }
  0xe5   :  { %v1122_v14 = vpop.f32.mrf.mxu0 }
  0xe6   :  { %v1186_v15 = vpop.f32.mrf.mxu1  ;;  %v1123_v63 = vadd.f32 %v1122_v14, %v1121_v12 }
  0xe7   :  { %v1124_v16 = vpop.f32.mrf.mxu0  ;;  %v1187_v10 = vadd.f32 %v1186_v15, %v1185_v13 }
  0xe8   :  { %v1188_v17 = vpop.f32.mrf.mxu1  ;;  %v619_v9 = vadd.f32 %v1123_v63, %v1688_v3 }
  0xe9   :  { %v1125_v18 = vpop.f32.mrf.mxu0 }
  0xea   :  { %v1189_v19 = vpop.f32.mrf.mxu1  ;;  %v1126_v0 = vadd.f32 %v1125_v18, %v1124_v16 }
  0xeb   :  { %v1127_v20 = vpop.f32.mrf.mxu0  ;;  %v1190_v16 = vadd.f32 %v1189_v19, %v1188_v17  ;;  %v716_v17 = vadd.f32 %v1187_v10, %v619_v9 }
  0xec   :  { %v1191_v21 = vpop.f32.mrf.mxu1  ;;  %v622_v11 = vadd.f32 %v1126_v0, %v1688_v3 }
  0xed   :  { %v1128_v22 = vpop.f32.mrf.mxu0 }
  0xee   :  { %v1192_v23 = vpop.f32.mrf.mxu1  ;;  %v1129_v1 = vadd.f32 %v1128_v22, %v1127_v20  ;;  %v719_v19 = vadd.f32 %v1190_v16, %v622_v11 }
  0xef   :  { %v1130_v24 = vpop.f32.mrf.mxu0 }
  0xf0   :  { %v1653_v25 = vpop.f32.mrf.mxu1  ;;  %v627_v12 = vadd.f32 %v1129_v1, %v1688_v3 }
  0xf1   :  { %v1131_v26 = vpop.f32.mrf.mxu0 }
  0xf2   :  { %v1195_v27 = vpop.f32.mrf.mxu1  ;;  %v1132_v4 = vadd.f32 %v1131_v26, %v1130_v24  ;;  %v1193_v26 = vadd.f32 %v1192_v23, %v1191_v21 }
  0xf3   :  { %v1133_v28 = vpop.f32.mrf.mxu0  ;;  %v1196_v13 = vadd.f32 %v1195_v27, %v1653_v25 }
  0xf4   :  { %v1197_v29 = vpop.f32.mrf.mxu1  ;;  %v630_v18 = vadd.f32 %v1132_v4, %v1688_v3 }
  0xf5   :  { %v1134_v30 = vpop.f32.mrf.mxu0 }
  0xf6   :  { %v1198_v31 = vpop.f32.mrf.mxu1  ;;  %v1135_v5 = vadd.f32 %v1134_v30, %v1133_v28  ;;  %v727_v23 = vadd.f32 %v1196_v13, %v630_v18 }
  0xf7   :  { %v1655_v32 = vpop.f32.mrf.mxu0  ;;  %v1199_v15 = vadd.f32 %v1198_v31, %v1197_v29 }
  0xf8   :  { %v1657_v33 = vpop.f32.mrf.mxu1  ;;  %v635_v20 = vadd.f32 %v1135_v5, %v1688_v3 }
  0xf9   :  { %v1659_v34 = vpop.f32.mrf.mxu0 }
  0xfa   :  { %v1661_v35 = vpop.f32.mrf.mxu1  ;;  %v1138_v4 = vadd.f32 %v1659_v34, %v1655_v32 }
  0xfb   :  { %v1139_v36 = vpop.f32.mrf.mxu0  ;;  %v1711_v25 = vadd.f32 %v1661_v35, %v1657_v33 }
  0xfc   :  { %v1663_v37 = vpop.f32.mrf.mxu1 }
  0xfd   :  { %v1140_v38 = vpop.f32.mrf.mxu0 }
  0xfe   :  { %v1665_v39 = vpop.f32.mrf.mxu1  ;;  %v1141_v28 = vadd.f32 %v1140_v38, %v1139_v36  ;;  %v1707_v36 = vadd.f32 %v1199_v15, %v635_v20 }
  0xff   :  { %v1142_v40 = vpop.f32.mrf.mxu0 }
 0x100   :  { %v1667_v41 = vpop.f32.mrf.mxu1  ;;  %v643_v27 = vadd.f32 %v1141_v28, %v1688_v3 }
 0x101   :  { %v1143_v42 = vpop.f32.mrf.mxu0 }
 0x102   :  { %v1669_v43 = vpop.f32.mrf.mxu1  ;;  %v1144_v30 = vadd.f32 %v1143_v42, %v1142_v40 }
 0x103   :  { %v1145_v44 = vpop.f32.mrf.mxu0  ;;  %v1208_v33 = vadd.f32 %v1669_v43, %v1667_v41 }
 0x104   :  { %v1671_v45 = vpop.f32.mrf.mxu1  ;;  %v646_v29 = vadd.f32 %v1144_v30, %v1688_v3 }
 0x105   :  { %v1146_v46 = vpop.f32.mrf.mxu0 }
 0x106   :  { %v1673_v47 = vpop.f32.mrf.mxu1  ;;  %v1732_v41 = vadd.f32 %v1208_v33, %v646_v29 }
 0x107   :  { %v1148_v48 = vpop.f32.mrf.mxu0  ;;  %v1211_v35 = vadd.f32 %v1673_v47, %v1671_v45 }
 0x108   :  { %v1675_v49 = vpop.f32.mrf.mxu1 }
 0x109   :  { %v1149_v50 = vpop.f32.mrf.mxu0 }
 0x10a   :  { %v1677_v51 = vpop.f32.mrf.mxu1  ;;  %v1150_v63 = vadd.f32 %v1149_v50, %v1148_v48 }
 0x10b   :  { %v1151_v52 = vpop.f32.mrf.mxu0 }
 0x10c   :  { %v1215_v53 = vpop.f32.mrf.mxu1  ;;  %v654_v32 = vadd.f32 %v1150_v63, %v1688_v3 }
 0x10d   :  { %v1152_v54 = vpop.f32.mrf.mxu0 }
 0x10e   :  { %v1216_v55 = vpop.f32.mrf.mxu1  ;;  %v1153_v22 = vadd.f32 %v1152_v54, %v1151_v52  ;;  %v1727_v54 = vadd.f32 %v1138_v4, %v1688_v3 }
 0x10f   :  { %v1154_v56 = vpop.f32.mrf.mxu0  ;;  %v1217_v34 = vadd.f32 %v1216_v55, %v1215_v53  ;;  %v1214_v53 = vadd.f32 %v1677_v51, %v1675_v49 }
 0x110   :  { %v1679_v57 = vpop.f32.mrf.mxu1  ;;  %v659_v52 = vadd.f32 %v1153_v22, %v1688_v3 }
 0x111   :  { %v1155_v58 = vpop.f32.mrf.mxu0 }
 0x112   :  { %v1219_v59 = vpop.f32.mrf.mxu1  ;;  %v1156_v0 = vadd.f32 %v1155_v58, %v1154_v56  ;;  %v756_v58 = vadd.f32 %v1217_v34, %v659_v52 }
 0x113   :  { %v1157_v60 = vpop.f32.mrf.mxu0  ;;  %v1220_v55 = vadd.f32 %v1219_v59, %v1679_v57 }
 0x114   :  { %v1681_v61 = vpop.f32.mrf.mxu1  ;;  %v662_v40 = vadd.f32 %v1156_v0, %v1688_v3 }
 0x115   :  { %v1158_v62 = vpop.f32.mrf.mxu0 }
 0x116   :  { %v1683_v2 = vpop.f32.mrf.mxu1  ;;  %v1159_v42 = vadd.f32 %v1158_v62, %v1157_v60  ;;  %v759_v5 = vadd.f32 %v1220_v55, %v662_v40 }
 0x117   :  { %v1690_v6 = vpop.f32.mrf.mxu0  ;;  %v1223_v9 = vadd.f32 %v1683_v2, %v1681_v61 }
 0x118   :  { %1772 = vst [vmem:[#allocation5_spill] sm:$0xff] %v1690_v6  ;;  %v1692_v7 = vpop.f32.mrf.mxu1  ;;  %v667_v43 = vadd.f32 %v1159_v42, %v1688_v3 }
 0x119   :  { %1773 = vst [vmem:[#allocation6_spill] sm:$0xff] %v1692_v7  ;;  %v1694_v8 = vpop.f32.mrf.mxu0  ;;  %v1147_v7 = vadd.f32 %v1146_v46, %v1145_v44  ;;  %v1205_v46 = vadd.f32 %v1665_v39, %v1663_v37 }
 0x11a   :  { %1774 = vst [vmem:[#allocation7_spill] sm:$0xff] %v1694_v8  ;;  %v1699_v14 = vpop.f32.mrf.mxu1  ;;  %v764_v63 = vadd.f32 %v1223_v9, %v667_v43 }
 0x11b   :  { %1775 = vst [vmem:[#allocation8_spill] sm:$0xff] %v1699_v14  ;;  %v1163_v24 = vpop.f32.mrf.mxu0  ;;  %v724_v14 = vadd.f32 %v1193_v26, %v627_v12  ;;  %v651_v31 = vadd.f32 %v1147_v7, %v1688_v3  ;;  %v740_v62 = vadd.f32 %v1205_v46, %v643_v27  ;;  %v751_v7 = vadd.f32 %v1214_v53, %v654_v32 }
 0x11c   :  { %v1227_v8 = vpop.f32.mrf.mxu1 }
 0x11d   :  { %v1164_v1 = vpop.f32.mrf.mxu0  ;;  %v748_v39 = vadd.f32 %v1211_v35, %v651_v31 }
 0x11e   :  { %v1228_v6 = vpop.f32.mrf.mxu1  ;;  %v1165_v48 = vadd.f32 %v1164_v1, %v1163_v24 }
 0x11f   :  { %v1166_v21 = vpop.f32.mrf.mxu0  ;;  %v1776_v10 = vld [vmem:[#allocation5_spill] sm:$0xff]  ;;  %v1229_v22 = vadd.f32 %v1228_v6, %v1227_v8 }
 0x120   :  { %v1716_v38 = vpop.f32.mrf.mxu1  ;;  %v675_v49 = vadd.f32 %v1165_v48, %v1688_v3  ;;  %v1778_v35 = vld [vmem:[#allocation6_spill] sm:$0xff] }
 0x121   :  { %v1167_v44 = vpop.f32.mrf.mxu0  ;;  %v1777_v11 = vld [vmem:[#allocation7_spill] sm:$0xff] }
 0x122   :  { %v1231_v50 = vpop.f32.mrf.mxu1  ;;  %v1162_v12 = vadd.f32 %v1777_v11, %v1776_v10  ;;  %v772_v52 = vadd.f32 %v1229_v22, %v675_v49  ;;  %v1779_v48 = vld [vmem:[#allocation8_spill] sm:$0xff] }
 0x123   :  { %v1255_v56 = vpop.f32.mrf.mxu0  ;;  %v1226_v53 = vadd.f32 %v1779_v48, %v1778_v35 }
 0x124   :  { %v821_v60 = vadd.f32 %v1255_v56, %v724_v14  ;;  %v1263_v37 = vpop.f32.mrf.mxu1  ;;  %v1168_v14 = vadd.f32 %v1167_v44, %v1166_v21  ;;  %v670_v29 = vadd.f32 %v1162_v12, %v1688_v3 }
 0x125   :  { %v853_v45 = vadd.f32 %v1263_v37, %v756_v58  ;;  %v812_v47 = vpop.f32.mrf.mxu0 }
 0x126   :  { %v877_v51 = vmax.f32 %v821_v60, 0.0  ;;  %v813_v57 = vadd.f32 %v812_v47, %v716_v17  ;;  %v844_v59 = vpop.f32.mrf.mxu1  ;;  %v678_v21 = vadd.f32 %v1168_v14, %v1688_v3 }
 0x127   :  { %v885_v16 = vmax.f32 %v853_v45, 0.0  ;;  %v845_v18 = vadd.f32 %v844_v59, %v748_v39  ;;  %v1256_v20 = vpop.f32.mrf.mxu0 }
 0x128   :  { %v1091_v24 = vpack.c.bf16 %v877_v51, %v877_v51  ;;  %v875_v26 = vmax.f32 %v813_v57, 0.0  ;;  %v824_v28 = vadd.f32 %v1256_v20, %v727_v23  ;;  %v1264_v30 = vpop.f32.mrf.mxu1  ;;  %v767_v51 = vadd.f32 %v1226_v53, %v670_v29 }
 0x129   :  { %v1099_v13 = vpack.c.bf16 %v885_v16, %v885_v16  ;;  %v883_v15 = vmax.f32 %v845_v18, 0.0  ;;  %v856_v61 = vadd.f32 %v1264_v30, %v759_v5  ;;  %v815_v2 = vpop.f32.mrf.mxu0  ;;  %v735_v5 = vadd.f32 %v1711_v25, %v1727_v54 }
 0x12a   :  { %958 = vst.msk [vmem:[#allocation2 + $0x8] sm:$0xf] %vm955_vm1, %v1091_v24  ;;  %v1089_v0 = vpack.c.bf16 %v875_v26, %v875_v26  ;;  %v878_v1 = vmax.f32 %v824_v28, 0.0  ;;  %v816_v17 = vadd.f32 %v815_v2, %v719_v19  ;;  %v847_v4 = vpop.f32.mrf.mxu1  ;;  %v1232_v19 = vadd.f32 %v1231_v50, %v1716_v38 }
 0x12b   :  { %966 = vst.msk [vmem:[#allocation2 + $0x28] sm:$0xf] %vm955_vm1, %v1099_v13  ;;  %v1097_v6 = vpack.c.bf16 %v883_v15, %v883_v15  ;;  %v886_v8 = vmax.f32 %v856_v61, 0.0  ;;  %v848_v23 = vadd.f32 %v847_v4, %v751_v7  ;;  %v1259_v27 = vpop.f32.mrf.mxu0 }
 0x12c   :  { %956 = vst.msk [vmem:[#allocation2] sm:$0xf] %vm955_vm1, %v1089_v0  ;;  %v1092_v31 = vpack.c.bf16 %v878_v1, %v878_v1  ;;  %v876_v32 = vmax.f32 %v816_v17, 0.0  ;;  %v837_v34 = vadd.f32 %v1259_v27, %v740_v62  ;;  %v1267_v40 = vpop.f32.mrf.mxu1  ;;  %v775_v39 = vadd.f32 %v1232_v19, %v678_v21 }
 0x12d   :  { %964 = vst.msk [vmem:[#allocation2 + $0x20] sm:$0xf] %vm955_vm1, %v1097_v6  ;;  %v1100_v42 = vpack.c.bf16 %v886_v8, %v886_v8  ;;  %v884_v44 = vmax.f32 %v848_v23, 0.0  ;;  %v869_v46 = vadd.f32 %v1267_v40, %v772_v52  ;;  %v828_v33 = vpop.f32.mrf.mxu0 }
 0x12e   :  { %959 = vst.msk [vmem:[#allocation2 + $0xc] sm:$0xf] %vm955_vm1, %v1092_v31  ;;  %v1090_v3 = vpack.c.bf16 %v876_v32, %v876_v32  ;;  %v881_v55 = vmax.f32 %v837_v34, 0.0  ;;  %v829_v56 = vadd.f32 %v828_v33, %v1707_v36  ;;  %v860_v58 = vpop.f32.mrf.mxu1 }
 0x12f   :  { %967 = vst.msk [vmem:[#allocation2 + $0x2c] sm:$0xf] %vm955_vm1, %v1100_v42  ;;  %v1098_v60 = vpack.c.bf16 %v884_v44, %v884_v44  ;;  %v889_v38 = vmax.f32 %v869_v46, 0.0  ;;  %v861_v50 = vadd.f32 %v860_v58, %v764_v63  ;;  %v1260_v37 = vpop.f32.mrf.mxu0 }
 0x130   :  { %957 = vst.msk [vmem:[#allocation2 + $0x4] sm:$0xf] %vm955_vm1, %v1090_v3  ;;  %v1095_v62 = vpack.c.bf16 %v881_v55, %v881_v55  ;;  %v879_v43 = vmax.f32 %v829_v56, 0.0  ;;  %v840_v45 = vadd.f32 %v1260_v37, %v1732_v41  ;;  %v1268_v47 = vpop.f32.mrf.mxu1 }
 0x131   :  { %965 = vst.msk [vmem:[#allocation2 + $0x24] sm:$0xf] %vm955_vm1, %v1098_v60  ;;  %v1103_v36 = vpack.c.bf16 %v889_v38, %v889_v38  ;;  %v887_v7 = vmax.f32 %v861_v50, 0.0  ;;  %v872_v9 = vadd.f32 %v1268_v47, %v775_v39  ;;  %v831_v49 = vpop.f32.mrf.mxu0 }
 0x132   :  { %962 = vst.msk [vmem:[#allocation2 + $0x18] sm:$0xf] %vm955_vm1, %v1095_v62  ;;  %v1093_v57 = vpack.c.bf16 %v879_v43, %v879_v43  ;;  %v882_v59 = vmax.f32 %v840_v45, 0.0  ;;  %v832_v10 = vadd.f32 %v831_v49, %v735_v5  ;;  %v863_v11 = vpop.f32.mrf.mxu1 }
 0x133   :  { %970 = vst.msk [vmem:[#allocation2 + $0x38] sm:$0xf] %vm955_vm1, %v1103_v36  ;;  %v1101_v41 = vpack.c.bf16 %v887_v7, %v887_v7  ;;  %v890_v12 = vmax.f32 %v872_v9, 0.0  ;;  %v864_v14 = vadd.f32 %v863_v11, %v767_v51 }
 0x134   :  { %960 = vst.msk [vmem:[#allocation2 + $0x10] sm:$0xf] %vm955_vm1, %v1093_v57  ;;  %v1096_v25 = vpack.c.bf16 %v882_v59, %v882_v59  ;;  %v880_v54 = vmax.f32 %v832_v10, 0.0 }
 0x135   :  { %968 = vst.msk [vmem:[#allocation2 + $0x30] sm:$0xf] %vm955_vm1, %v1101_v41  ;;  %v1104_v16 = vpack.c.bf16 %v890_v12, %v890_v12  ;;  %v888_v18 = vmax.f32 %v864_v14, 0.0 }
 0x136   :  { %963 = vst.msk [vmem:[#allocation2 + $0x1c] sm:$0xf] %vm955_vm1, %v1096_v25  ;;  %v1094_v20 = vpack.c.bf16 %v880_v54, %v880_v54 }
 0x137   :  { %971 = vst.msk [vmem:[#allocation2 + $0x3c] sm:$0xf] %vm955_vm1, %v1104_v16  ;;  %v1102_v22 = vpack.c.bf16 %v888_v18, %v888_v18 }
 0x138   :  { %961 = vst.msk [vmem:[#allocation2 + $0x14] sm:$0xf] %vm955_vm1, %v1094_v20 }
 0x139   :  { %969 = vst.msk [vmem:[#allocation2 + $0x34] sm:$0xf] %vm955_vm1, %v1102_v22 }
 0x13a   :  { %1383 = shalt.err (!%p1380_p4)
}
 0x13b   :  { %s1395_s30 = smov 64   ;;  %s1396_s4 = smov 4  }
 0x13c   :  { %983 = dma.vmem_to_hbm [thread:$0]  %s978_s28, 1024, %s1771_s3, [#allocation3], %s1395_s30, %s1395_s30, %s1396_s4  }
 0x13d   :  { %1392 = dma.done.wait [#allocation3], 1024  }
 0x13e   :  { %1393 = vsyncadd [#allocation3], 4294966272 }
 0x13f   :  { %987 = vsyncpa [#allocation3], 1 }

</bundles_post_ra>
